<compile_context>
chip_gen: v6e
topology: v6e:2x2x1
jax: 0.10.0
libtpu: 0.0.40
codegen_flags: <defaults>
</compile_context>

<pallas_src>
import functools

import jax
import jax.numpy as jnp
from jax.experimental import pallas as pl
from jax.experimental.pallas import tpu as pltpu


def _round_up(n, m):
    return (n + m - 1) // m * m


@functools.lru_cache(maxsize=None)
def _vmem_limit_bytes():
    """~85% of physical VMEM per core; conservative fallback if query fails."""
    try:
        info = pltpu.get_tpu_info()
        cap = getattr(info, "vmem_capacity_bytes", None)
        if cap:
            return max(32 * 1024 * 1024, int(cap * 0.85))
    except Exception:
        pass
    return 64 * 1024 * 1024


def _mlp_kernel(x_ref, w1_ref, b1_ref, w2_ref, b2_ref, o_ref):
    # Use true-f32 MXU passes when the compute dtype is f32 (exactness);
    # default precision for bf16 inputs.
    prec = jax.lax.Precision.HIGHEST if x_ref.dtype == jnp.float32 else None
    # fc1 (MXU, f32 accumulation) + bias + ReLU (VPU, f32)
    h = jnp.dot(x_ref[...], w1_ref[...],
                preferred_element_type=jnp.float32, precision=prec)
    h = jnp.maximum(h + b1_ref[...], 0.0)
    # fc2 + bias + ReLU; cast hidden to the weight compute dtype (bf16 path).
    h = h.astype(w2_ref.dtype)
    o = jnp.dot(h, w2_ref[...], preferred_element_type=jnp.float32, precision=prec)
    o_ref[...] = jnp.maximum(o + b2_ref[...], 0.0).astype(o_ref.dtype)


def prepare_params(w1, b1, w2, b2, compute_dtype=jnp.float32, out_dtype=None):
    """One-time packing of PyTorch-layout params.

    w1: (fc1, in), b1: (fc1,), w2: (fc2, fc1), b2: (fc2,).
    Transposes to (in, out), zero-pads every feature dim to a multiple of 128
    (lane-dense), and casts weights to `compute_dtype` (f32 or bf16).
    Zero padding is exact: padded input cols hit zero weight rows, padded
    hidden units are ReLU(0 + 0) = 0 and hit zero rows of W2.

    Note: on v5e/v6e/v7x the MXU runs bf16 natively; prefer
    compute_dtype=jnp.bfloat16 when the model tolerates it (f32 accumulation
    is preserved either way).
    """
    fc1, in_size = w1.shape
    fc2 = w2.shape[0]
    in_p = _round_up(in_size, 128)
    fc1_p = _round_up(fc1, 128)
    fc2_p = _round_up(fc2, 128)
    out_dtype = compute_dtype if out_dtype is None else out_dtype

    w1_t = jnp.zeros((in_p, fc1_p), compute_dtype)
    w1_t = w1_t.at[:in_size, :fc1].set(jnp.asarray(w1, compute_dtype).T)
    w2_t = jnp.zeros((fc1_p, fc2_p), compute_dtype)
    w2_t = w2_t.at[:fc1, :fc2].set(jnp.asarray(w2, compute_dtype).T)
    # Biases stay f32 (added to the f32 accumulator).
    b1_p = jnp.zeros((1, fc1_p), jnp.float32).at[0, :fc1].set(jnp.asarray(b1, jnp.float32))
    b2_p = jnp.zeros((1, fc2_p), jnp.float32).at[0, :fc2].set(jnp.asarray(b2, jnp.float32))

    return dict(
        w1=w1_t, b1=b1_p, w2=w2_t, b2=b2_p,
        in_size=in_size, fc1=fc1, fc2=fc2,
        in_p=in_p, fc1_p=fc1_p, fc2_p=fc2_p,
        compute_dtype=compute_dtype, out_dtype=out_dtype,
    )


@functools.partial(
    jax.jit, static_argnames=("block_b", "out_dtype", "single_buffer_weights"))
def _forward_impl(x, w1, b1, w2, b2, block_b, out_dtype, single_buffer_weights):
    B_pad, in_p = x.shape
    fc1_p = w1.shape[1]
    fc2_p = w2.shape[1]
    tb = block_b
    grid = (B_pad // tb,)

    # Block-constant weights/biases: single-buffer them (no overlap to gain).
    wmode = dict(pipeline_mode=pl.Buffered(1)) if single_buffer_weights else {}

    flops = 2 * B_pad * (in_p * fc1_p + fc1_p * fc2_p)
    bytes_accessed = (
        x.size * x.dtype.itemsize
        + w1.size * w1.dtype.itemsize + w2.size * w2.dtype.itemsize
        + b1.size * b1.dtype.itemsize + b2.size * b2.dtype.itemsize
        + B_pad * fc2_p * jnp.dtype(out_dtype).itemsize
    )
    cost = pl.CostEstimate(flops=flops, transcendentals=0,
                           bytes_accessed=bytes_accessed)

    return pl.pallas_call(
        _mlp_kernel,
        out_shape=jax.ShapeDtypeStruct((B_pad, fc2_p), out_dtype),
        grid=grid,
        in_specs=[
            # Activations: tiled over batch (double-buffered by Pallas).
            pl.BlockSpec((tb, in_p), lambda i: (i, 0)),
            # Weights / biases: same block every step -> resident in VMEM.
            pl.BlockSpec((in_p, fc1_p), lambda i: (0, 0), **wmode),
            pl.BlockSpec((1, fc1_p), lambda i: (0, 0), **wmode),
            pl.BlockSpec((fc1_p, fc2_p), lambda i: (0, 0), **wmode),
            pl.BlockSpec((1, fc2_p), lambda i: (0, 0), **wmode),
        ],
        out_specs=pl.BlockSpec((tb, fc2_p), lambda i: (i, 0)),
        compiler_params=pltpu.CompilerParams(
            dimension_semantics=("parallel",),      # v7x: shard batch over both TCs
            vmem_limit_bytes=_vmem_limit_bytes(),   # per-generation, with headroom
        ),
        cost_estimate=cost,
    )(x, w1, b1, w2, b2)


def _forward(x_p, params, tb, out_dtype):
    args = (x_p, params["w1"], params["b1"], params["w2"], params["b2"])
    try:
        return _forward_impl(*args, block_b=tb, out_dtype=out_dtype,
                             single_buffer_weights=True)
    except Exception:
        # Fallback if this jax build rejects pipeline_mode=pl.Buffered(1).
        return _forward_impl(*args, block_b=tb, out_dtype=out_dtype,
                             single_buffer_weights=False)


def simple_fc_net(x, params, block_b=1024):
    """Forward pass. x: (B, input_size); params from prepare_params."""
    B = x.shape[0]
    in_size, in_p = params["in_size"], params["in_p"]
    fc2, fc2_p = params["fc2"], params["fc2_p"]
    cdt = params["compute_dtype"]
    out_dtype = params["out_dtype"]

    # Sublane packing: 8 rows/vreg for 32-bit, 16 for bf16.
    sub = 16 if jnp.dtype(cdt) == jnp.dtype(jnp.bfloat16) else 8
    B_sub = _round_up(max(B, 1), sub)
    tb = min(block_b, B_sub)
    # Prefer >= 2 grid steps so the "parallel" batch axis can actually split
    # across v7x's two TensorCores (harmless elsewhere).
    if B_sub >= 2 * sub and tb > B_sub // 2:
        tb = max(sub, (B_sub // 2) // sub * sub)
    B_pad = _round_up(B_sub, tb)

    x = jnp.asarray(x)
    if B == B_pad and in_size == in_p:
        # Aligned case: no wrapper-side padded copy (kernel is mem-bound).
        x_p = x.astype(cdt)
    else:
        # TODO(synk): handle the ragged last batch tile with masked stores
        #             instead of materializing a padded copy.
        x_p = jnp.zeros((B_pad, in_p), cdt).at[:B, :in_size].set(x.astype(cdt))

    out = _forward(x_p, params, tb, out_dtype)
    if B_pad != B or fc2_p != fc2:
        out = out[:B, :fc2]
    return out


def _init_params(key, input_size=10, fc1_size=8, fc2_size=4):
    # Deterministic init mimicking PyTorch Linear default: U(-1/sqrt(fan_in), +).
    k1, k2, k3, k4 = jax.random.split(key, 4)
    bound1 = 1.0 / (input_size ** 0.5)
    bound2 = 1.0 / (fc1_size ** 0.5)
    w1 = jax.random.uniform(k1, (fc1_size, input_size), jnp.float32, -bound1, bound1)
    b1 = jax.random.uniform(k2, (fc1_size,), jnp.float32, -bound1, bound1)
    w2 = jax.random.uniform(k3, (fc2_size, fc1_size), jnp.float32, -bound2, bound2)
    b2 = jax.random.uniform(k4, (fc2_size,), jnp.float32, -bound2, bound2)
    return w1, b1, w2, b2


if __name__ == "__main__":
    key = jax.random.PRNGKey(0)
    kx, kp = jax.random.split(key)

    batch, input_size, fc1_size, fc2_size = 2, 10, 8, 4
    x = jax.random.normal(kx, (batch, input_size), jnp.float32)
    w1, b1, w2, b2 = _init_params(kp, input_size, fc1_size, fc2_size)

    # Pure-JAX reference (same math path as the PyTorch module).
    h_ref = jnp.maximum(x @ w1.T + b1, 0.0)
    o_ref = jnp.maximum(h_ref @ w2.T + b2, 0.0)

    # f32 compute path (Precision.HIGHEST -> exact).
    params_f32 = prepare_params(w1, b1, w2, b2, compute_dtype=jnp.float32)
    out = jax.block_until_ready(simple_fc_net(x, params_f32))
    assert out.shape == (batch, fc2_size)
    assert jnp.allclose(out, o_ref, atol=1e-5), "f32 mismatch vs reference"

    # bf16 compute + bf16 output (native MXU path), f32 accumulation.
    params_bf16 = prepare_params(w1, b1, w2, b2, compute_dtype=jnp.bfloat16)
    out_bf16 = jax.block_until_ready(simple_fc_net(x, params_bf16))
    assert out_bf16.shape == (batch, fc2_size)
    assert jnp.allclose(out_bf16.astype(jnp.float32), o_ref, atol=3e-2, rtol=3e-2), \
        "bf16 mismatch vs reference"

    print("KERNEL_OK")
</pallas_src>

<mosaic_0001>
module attributes {stable_mosaic.version = 11 : i64} {
  func.func @_mlp_kernel(%arg0: i32, %arg1: memref<8x128xf32, #tpu.memory_space<vmem>>, %arg2: memref<128x128xf32, #tpu.memory_space<vmem>>, %arg3: memref<1x128xf32, #tpu.memory_space<vmem>>, %arg4: memref<128x128xf32, #tpu.memory_space<vmem>>, %arg5: memref<1x128xf32, #tpu.memory_space<vmem>>, %arg6: memref<8x128xf32, #tpu.memory_space<vmem>>) attributes {dimension_semantics = [#tpu.dimension_semantics<parallel>], iteration_bounds = array<i64: 1>, scalar_prefetch = 0 : i64, scratch_operands = 0 : i64, tpu.core_type = #tpu.core_type<tc>, window_params = [{transform_indices = @transform_0, window_bounds = array<i64: 8, 128>}, {pipeline_mode = #tpu.pipeline_mode<synchronous>, transform_indices = @transform_1, window_bounds = array<i64: 128, 128>}, {pipeline_mode = #tpu.pipeline_mode<synchronous>, transform_indices = @transform_2, window_bounds = array<i64: 1, 128>}, {pipeline_mode = #tpu.pipeline_mode<synchronous>, transform_indices = @transform_3, window_bounds = array<i64: 128, 128>}, {pipeline_mode = #tpu.pipeline_mode<synchronous>, transform_indices = @transform_4, window_bounds = array<i64: 1, 128>}, {transform_indices = @transform_5, window_bounds = array<i64: 8, 128>}]} {
    %c0 = arith.constant 0 : index
    %c0_0 = arith.constant 0 : index
    %0 = vector.load %arg1[%c0, %c0_0] : memref<8x128xf32, #tpu.memory_space<vmem>>, vector<8x128xf32>
    %c0_1 = arith.constant 0 : index
    %c0_2 = arith.constant 0 : index
    %1 = vector.load %arg2[%c0_1, %c0_2] : memref<128x128xf32, #tpu.memory_space<vmem>>, vector<128x128xf32>
    %cst = arith.constant dense<0.000000e+00> : vector<8x128xf32>
    %2 = tpu.matmul %0, %1, %cst {dimension_numbers = #tpu.dot_dimension_numbers<[1], [0], [0], [1], [0, 0, 1, 1], [], []>, precision = #tpu.contract_precision<fp32>} : vector<8x128xf32>, vector<128x128xf32>, vector<8x128xf32> -> vector<8x128xf32>
    %c0_3 = arith.constant 0 : index
    %c0_4 = arith.constant 0 : index
    %3 = vector.load %arg3[%c0_3, %c0_4] : memref<1x128xf32, #tpu.memory_space<vmem>>, vector<1x128xf32>
    %4 = vector.broadcast %3 : vector<1x128xf32> to vector<8x128xf32>
    %5 = arith.addf %2, %4 : vector<8x128xf32>
    %cst_5 = arith.constant 0.000000e+00 : f32
    %6 = vector.broadcast %cst_5 : f32 to vector<8x128xf32>
    %7 = arith.maximumf %5, %6 : vector<8x128xf32>
    %c0_6 = arith.constant 0 : index
    %c0_7 = arith.constant 0 : index
    %8 = vector.load %arg4[%c0_6, %c0_7] : memref<128x128xf32, #tpu.memory_space<vmem>>, vector<128x128xf32>
    %cst_8 = arith.constant dense<0.000000e+00> : vector<8x128xf32>
    %9 = tpu.matmul %7, %8, %cst_8 {dimension_numbers = #tpu.dot_dimension_numbers<[1], [0], [0], [1], [0, 0, 1, 1], [], []>, precision = #tpu.contract_precision<fp32>} : vector<8x128xf32>, vector<128x128xf32>, vector<8x128xf32> -> vector<8x128xf32>
    %c0_9 = arith.constant 0 : index
    %c0_10 = arith.constant 0 : index
    %10 = vector.load %arg5[%c0_9, %c0_10] : memref<1x128xf32, #tpu.memory_space<vmem>>, vector<1x128xf32>
    %11 = vector.broadcast %10 : vector<1x128xf32> to vector<8x128xf32>
    %12 = arith.addf %9, %11 : vector<8x128xf32>
    %cst_11 = arith.constant 0.000000e+00 : f32
    %13 = vector.broadcast %cst_11 : f32 to vector<8x128xf32>
    %14 = arith.maximumf %12, %13 : vector<8x128xf32>
    %c0_12 = arith.constant 0 : index
    %c0_13 = arith.constant 0 : index
    %15 = vector.load %arg6[%c0_12, %c0_13] : memref<8x128xf32, #tpu.memory_space<vmem>>, vector<8x128xf32>
    tpu.vector_store %arg6[%c0_12, %c0_13], %14 {strides = array<i32>} : memref<8x128xf32, #tpu.memory_space<vmem>>, vector<8x128xf32>,
    return
  }
  func.func @transform_0(%arg0: i32) -> (i32, i32) {
    %c0_i32 = arith.constant 0 : i32
    %c0_i32_0 = arith.constant 0 : i32
    return %arg0, %c0_i32 : i32, i32
  }
  func.func @transform_1(%arg0: i32) -> (i32, i32) {
    %c0_i32 = arith.constant 0 : i32
    %c0_i32_0 = arith.constant 0 : i32
    %c0_i32_1 = arith.constant 0 : i32
    return %c0_i32, %c0_i32_0 : i32, i32
  }
  func.func @transform_2(%arg0: i32) -> (i32, i32) {
    %c0_i32 = arith.constant 0 : i32
    %c0_i32_0 = arith.constant 0 : i32
    %c0_i32_1 = arith.constant 0 : i32
    return %c0_i32, %c0_i32_0 : i32, i32
  }
  func.func @transform_3(%arg0: i32) -> (i32, i32) {
    %c0_i32 = arith.constant 0 : i32
    %c0_i32_0 = arith.constant 0 : i32
    %c0_i32_1 = arith.constant 0 : i32
    return %c0_i32, %c0_i32_0 : i32, i32
  }
  func.func @transform_4(%arg0: i32) -> (i32, i32) {
    %c0_i32 = arith.constant 0 : i32
    %c0_i32_0 = arith.constant 0 : i32
    %c0_i32_1 = arith.constant 0 : i32
    return %c0_i32, %c0_i32_0 : i32, i32
  }
  func.func @transform_5(%arg0: i32) -> (i32, i32) {
    %c0_i32 = arith.constant 0 : i32
    %c0_i32_0 = arith.constant 0 : i32
    return %arg0, %c0_i32 : i32, i32
  }
}

module attributes {stable_mosaic.version = 11 : i64} {
  func.func @_mlp_kernel(%arg0: i32, %arg1: memref<8x128xf32, #tpu.memory_space<vmem>>, %arg2: memref<128x128xf32, #tpu.memory_space<vmem>>, %arg3: memref<1x128xf32, #tpu.memory_space<vmem>>, %arg4: memref<128x128xf32, #tpu.memory_space<vmem>>, %arg5: memref<1x128xf32, #tpu.memory_space<vmem>>, %arg6: memref<8x128xf32, #tpu.memory_space<vmem>>) attributes {dimension_semantics = [#tpu.dimension_semantics<parallel>], iteration_bounds = array<i64: 1>, scalar_prefetch = 0 : i64, scratch_operands = 0 : i64, tpu.core_type = #tpu.core_type<tc>, window_params = [{transform_indices = @transform_0, window_bounds = array<i64: 8, 128>}, {pipeline_mode = #tpu.pipeline_mode<synchronous>, transform_indices = @transform_1, window_bounds = array<i64: 128, 128>}, {pipeline_mode = #tpu.pipeline_mode<synchronous>, transform_indices = @transform_2, window_bounds = array<i64: 1, 128>}, {pipeline_mode = #tpu.pipeline_mode<synchronous>, transform_indices = @transform_3, window_bounds = array<i64: 128, 128>}, {pipeline_mode = #tpu.pipeline_mode<synchronous>, transform_indices = @transform_4, window_bounds = array<i64: 1, 128>}, {transform_indices = @transform_5, window_bounds = array<i64: 8, 128>}]} {
    %c0 = arith.constant 0 : index
    %c0_0 = arith.constant 0 : index
    %0 = vector.load %arg1[%c0, %c0_0] : memref<8x128xf32, #tpu.memory_space<vmem>>, vector<8x128xf32>
    %c0_1 = arith.constant 0 : index
    %c0_2 = arith.constant 0 : index
    %1 = vector.load %arg2[%c0_1, %c0_2] : memref<128x128xf32, #tpu.memory_space<vmem>>, vector<128x128xf32>
    %cst = arith.constant dense<0.000000e+00> : vector<8x128xf32>
    %2 = tpu.matmul %0, %1, %cst {dimension_numbers = #tpu.dot_dimension_numbers<[1], [0], [0], [1], [0, 0, 1, 1], [], []>, precision = #tpu.contract_precision<fp32>} : vector<8x128xf32>, vector<128x128xf32>, vector<8x128xf32> -> vector<8x128xf32>
    %c0_3 = arith.constant 0 : index
    %c0_4 = arith.constant 0 : index
    %3 = vector.load %arg3[%c0_3, %c0_4] : memref<1x128xf32, #tpu.memory_space<vmem>>, vector<1x128xf32>
    %4 = vector.broadcast %3 : vector<1x128xf32> to vector<8x128xf32>
    %5 = arith.addf %2, %4 : vector<8x128xf32>
    %cst_5 = arith.constant 0.000000e+00 : f32
    %6 = vector.broadcast %cst_5 : f32 to vector<8x128xf32>
    %7 = arith.maximumf %5, %6 : vector<8x128xf32>
    %c0_6 = arith.constant 0 : index
    %c0_7 = arith.constant 0 : index
    %8 = vector.load %arg4[%c0_6, %c0_7] : memref<128x128xf32, #tpu.memory_space<vmem>>, vector<128x128xf32>
    %cst_8 = arith.constant dense<0.000000e+00> : vector<8x128xf32>
    %9 = tpu.matmul %7, %8, %cst_8 {dimension_numbers = #tpu.dot_dimension_numbers<[1], [0], [0], [1], [0, 0, 1, 1], [], []>, precision = #tpu.contract_precision<fp32>} : vector<8x128xf32>, vector<128x128xf32>, vector<8x128xf32> -> vector<8x128xf32>
    %c0_9 = arith.constant 0 : index
    %c0_10 = arith.constant 0 : index
    %10 = vector.load %arg5[%c0_9, %c0_10] : memref<1x128xf32, #tpu.memory_space<vmem>>, vector<1x128xf32>
    %11 = vector.broadcast %10 : vector<1x128xf32> to vector<8x128xf32>
    %12 = arith.addf %9, %11 : vector<8x128xf32>
    %cst_11 = arith.constant 0.000000e+00 : f32
    %13 = vector.broadcast %cst_11 : f32 to vector<8x128xf32>
    %14 = arith.maximumf %12, %13 : vector<8x128xf32>
    %c0_12 = arith.constant 0 : index
    %c0_13 = arith.constant 0 : index
    %15 = vector.load %arg6[%c0_12, %c0_13] : memref<8x128xf32, #tpu.memory_space<vmem>>, vector<8x128xf32>
    tpu.vector_store %arg6[%c0_12, %c0_13], %14 {strides = array<i32>} : memref<8x128xf32, #tpu.memory_space<vmem>>, vector<8x128xf32>,
    return
  }
  func.func @transform_0(%arg0: i32) -> (i32, i32) {
    %c0_i32 = arith.constant 0 : i32
    %c0_i32_0 = arith.constant 0 : i32
    return %arg0, %c0_i32 : i32, i32
  }
  func.func @transform_1(%arg0: i32) -> (i32, i32) {
    %c0_i32 = arith.constant 0 : i32
    %c0_i32_0 = arith.constant 0 : i32
    %c0_i32_1 = arith.constant 0 : i32
    return %c0_i32, %c0_i32_0 : i32, i32
  }
  func.func @transform_2(%arg0: i32) -> (i32, i32) {
    %c0_i32 = arith.constant 0 : i32
    %c0_i32_0 = arith.constant 0 : i32
    %c0_i32_1 = arith.constant 0 : i32
    return %c0_i32, %c0_i32_0 : i32, i32
  }
  func.func @transform_3(%arg0: i32) -> (i32, i32) {
    %c0_i32 = arith.constant 0 : i32
    %c0_i32_0 = arith.constant 0 : i32
    %c0_i32_1 = arith.constant 0 : i32
    return %c0_i32, %c0_i32_0 : i32, i32
  }
  func.func @transform_4(%arg0: i32) -> (i32, i32) {
    %c0_i32 = arith.constant 0 : i32
    %c0_i32_0 = arith.constant 0 : i32
    %c0_i32_1 = arith.constant 0 : i32
    return %c0_i32, %c0_i32_0 : i32, i32
  }
  func.func @transform_5(%arg0: i32) -> (i32, i32) {
    %c0_i32 = arith.constant 0 : i32
    %c0_i32_0 = arith.constant 0 : i32
    return %arg0, %c0_i32 : i32, i32
  }
}

</mosaic_0001>

<bundles_post_ra>
// kernel: _forward_impl.1
= control target key start
LH: loop header
LB: loop body
LE: loop exit
PB: predicated region body
PF: predicated region fallthrough
CT: control target
= control target key end

     0   :  { %10 = vsyncpa [#allocation3], 0  ;;  %s2906_s0 = inlined_call_operand.hbm [shape: f32[8,128], index: 0, kind: input, shape index: {}]   ;;  %s2907_s1 = inlined_call_operand.hbm [shape: f32[128,128], index: 1, kind: input, shape index: {}]   ;;  %s2908_s2 = inlined_call_operand.vmem [shape: f32[1,128], index: 2, kind: input, shape index: {}]   ;;  %s2909_s3 = inlined_call_operand.hbm [shape: f32[128,128], index: 3, kind: input, shape index: {}]   ;;  %s2910_s4 = inlined_call_operand.vmem [shape: f32[1,128], index: 4, kind: input, shape index: {}]   ;;  %s2911_s5 = inlined_call_operand.hbm [shape: f32[8,128], index: 5, kind: output, shape index: {}]  }
   0x1   :  { %11 = vsyncpa [#allocation6], 0 }
   0x2   :  { %12 = vsyncpa [#allocation4], 0  ;;  %s2128_s18 = smov [#allocation5]  }
   0x3   :  { %s28_s19 = sshll.u32 %s2128_s18, 4  ;;  %s29_s19 = int_to_ptr.vmem [resolvable:$true] %s28_s19 }
   0x4   :  { %s2050_s20 = scalar_lea.vmem %s29_s19, 2048  ;;  %p2055_p1 = scmp.lt.s32.totalorder %s29_s19, %s29_s19 }
   0x5   :  { %p2051_p0 = scmp.ne.s32.totalorder %s29_s19, %s2050_s20  ;;  %p2056_p2 = scmp.lt.s32.totalorder %s2050_s20, %s2050_s20 }
   0x7   :  { %p2057_p3 = por %p2056_p2, %p2055_p1 }
   0x9   :  { %p2058_p4 = pnand %p2057_p3, %p2051_p0 }
   0xb   :  { %2061 = shalt.err (!%p2058_p4)
}
   0xc   :  { %s2129_s21 = smov 128   ;;  %s2130_s22 = smov 8  }
   0xd   :  { %34 = dma.hbm_to_vmem [thread:$0]  %s2907_s1, 2048, %s29_s19, [#allocation6], %s2129_s21, %s2129_s21, %s2130_s22  }
   0xe   :  { %s2131_s25 = smov [#allocation2]   ;;  %s2132_s27 = smov [#allocation7]  }
   0xf   :  { %s19_s26 = sshll.u32 %s2131_s25, 4  ;;  %s42_s28 = sshll.u32 %s2132_s27, 4  ;;  %s20_s26 = int_to_ptr.vmem [resolvable:$true] %s19_s26  ;;  %s43_s28 = int_to_ptr.vmem [resolvable:$true] %s42_s28 }
  0x10   :  { %s2070_s29 = scalar_lea.vmem %s20_s26, 128  ;;  %p2075_p6 = scmp.lt.s32.totalorder %s20_s26, %s20_s26 }
  0x11   :  { %p2071_p5 = scmp.ne.s32.totalorder %s20_s26, %s2070_s29  ;;  %p2076_p7 = scmp.lt.s32.totalorder %s2070_s29, %s2070_s29 }
  0x13   :  { %p2077_p8 = por %p2076_p7, %p2075_p6 }
  0x15   :  { %p2078_p9 = pnand %p2077_p8, %p2071_p5 }
  0x17   :  { %2081 = shalt.err (!%p2078_p9)
}
  0x18   :  { %22 = dma.hbm_to_vmem [thread:$0]  %s2906_s0, 128, %s20_s26, [#allocation3]  }
  0x19   :  { %s2090_s7 = scalar_lea.vmem %s43_s28, 2048  ;;  %p2095_p11 = scmp.lt.s32.totalorder %s43_s28, %s43_s28 }
  0x1a   :  { %p2091_p10 = scmp.ne.s32.totalorder %s43_s28, %s2090_s7  ;;  %p2096_p12 = scmp.lt.s32.totalorder %s2090_s7, %s2090_s7 }
  0x1c   :  { %p2097_p13 = por %p2096_p12, %p2095_p11 }
  0x1e   :  { %p2098_p0 = pnand %p2097_p13, %p2091_p10 }
  0x20   :  { %2101 = shalt.err (!%p2098_p0)
}
  0x21   :  { %48 = dma.hbm_to_vmem [thread:$0]  %s2909_s3, 2048, %s43_s28, [#allocation6], %s2129_s21, %s2129_s21, %s2130_s22  }
  0x22   :  { %2122 = dma.done.wait [#allocation3], 128  }
  0x23   :  { %2123 = vsyncadd [#allocation3], 4294967168 }
  0x24   :  { %2124 = dma.done.wait [#allocation6], 4096  }
  0x25   :  { %2125 = vsyncadd [#allocation6], 4294963200  ;;  %v2133_v0 = vmov 0.0   ;;  %vm2134_vm0 = vmmov 0   ;;  %v76_v1 = vld [vmem:[#allocation5 + $0x78] sm:$0xff]  ;;  %v75_v2 = vld [vmem:[#allocation5 + $0x70] sm:$0xff] }
  0x26   :  { %1614 = vmatprep.subr.mxu0 %v2133_v0  ;;  %1649 = vmatprep.subr.mxu1 %v2133_v0  ;;  %v74_v3 = vld [vmem:[#allocation5 + $0x68] sm:$0xff]  ;;  %v2181_v4 = vand.u32 4294901760, %v76_v1  ;;  %v2183_v5 = vand.u32 4294901760, %v75_v2  ;;  %v73_v7 = vld [vmem:[#allocation5 + $0x60] sm:$0xff]  ;;  %v72_v8 = vld [vmem:[#allocation5 + $0x58] sm:$0xff]  ;;  %s2135_s10 = smov [#allocation8]  }
  0x27   :  { %1646 = vmatprep.mubr.msk.f32.mxu0 %vm2134_vm0, %v2133_v0  ;;  %1681 = vmatprep.mubr.msk.f32.mxu1 %vm2134_vm0, %v2133_v0  ;;  %v2185_v6 = vand.u32 4294901760, %v74_v3  ;;  %v71_v9 = vld [vmem:[#allocation5 + $0x50] sm:$0xff]  ;;  %v2187_v10 = vand.u32 4294901760, %v73_v7  ;;  %v2189_v11 = vand.u32 4294901760, %v72_v8  ;;  %v70_v13 = vld [vmem:[#allocation5 + $0x48] sm:$0xff]  ;;  %v69_v14 = vld [vmem:[#allocation5 + $0x40] sm:$0xff] }
  0x28   :  { %v2191_v12 = vand.u32 4294901760, %v71_v9  ;;  %1615 = vmatpush3.msra.mxu0 %v2181_v4  ;;  %v2195_v15 = vsub.f32 %v76_v1, %v2181_v4  ;;  %v2198_v16 = vsub.f32 %v75_v2, %v2183_v5  ;;  %v2200_v17 = vand.u32 4294901760, %v70_v13  ;;  %v68_v19 = vld [vmem:[#allocation5 + $0x38] sm:$0xff]  ;;  %v67_v26 = vld [vmem:[#allocation5 + $0x30] sm:$0xff]  ;;  %v66_v36 = vld [vmem:[#allocation5 + $0x28] sm:$0xff]  ;;  %s1398_s11 = sshll.u32 %s2135_s10, 4  ;;  %s1399_s11 = int_to_ptr.vmem [resolvable:$true] %s1398_s11 }
  0x29   :  { %v2203_v18 = vsub.f32 %v74_v3, %v2185_v6  ;;  %1616 = vmatprep.subr.mxu0 %v2133_v0  ;;  %v2207_v20 = vsub.f32 %v73_v7, %v2187_v10  ;;  %v2210_v21 = vsub.f32 %v72_v8, %v2189_v11  ;;  %v2216_v25 = vand.u32 4294901760, %v69_v14  ;;  %v65_v41 = vld [vmem:[#allocation5 + $0x20] sm:$0xff]  ;;  %v64_v49 = vld [vmem:[#allocation5 + $0x18] sm:$0xff]  ;;  %v63_v54 = vld [vmem:[#allocation5 + $0x10] sm:$0xff]  ;;  %s2102_s12 = scalar_lea.vmem %s1399_s11, 128  ;;  %p2107_p2 = scmp.lt.s32.totalorder %s1399_s11, %s1399_s11 }
  0x2a   :  { %1617 = vmatpush3.msra.mxu0 %v2183_v5  ;;  %v178_v22 = vand.u32 4294901760, %v2195_v15  ;;  %v185_v23 = vand.u32 4294901760, %v2198_v16  ;;  %v2220_v28 = vand.u32 4294901760, %v68_v19  ;;  %v2224_v30 = vsub.f32 %v71_v9, %v2191_v12  ;;  %v60_v50 = vld [vmem:[#allocation2] sm:$0xff]  ;;  %v62_v60 = vld [vmem:[#allocation5 + $0x8] sm:$0xff]  ;;  %v61_v7 = vld [vmem:[#allocation5] sm:$0xff]  ;;  %p2103_p1 = scmp.ne.s32.totalorder %s1399_s11, %s2102_s12  ;;  %p2108_p3 = scmp.lt.s32.totalorder %s2102_s12, %s2102_s12 }
  0x2b   :  { %v192_v24 = vand.u32 4294901760, %v2203_v18  ;;  %1618 = vmatprep.subr.mxu0 %v2133_v0  ;;  %v199_v27 = vand.u32 4294901760, %v2207_v20  ;;  %v206_v29 = vand.u32 4294901760, %v2210_v21  ;;  %v2237_v34 = vsub.f32 %v70_v13, %v2200_v17 }
  0x2c   :  { %1619 = vmatpush3.msra.mxu0 %v2185_v6  ;;  %v179_v31 = vsub.f32 %v2195_v15, %v178_v22  ;;  %v186_v32 = vsub.f32 %v2198_v16, %v185_v23  ;;  %v2240_v35 = vand.u32 4294901760, %v67_v26  ;;  %v213_v40 = vand.u32 4294901760, %v2224_v30  ;;  %p2109_p4 = por %p2108_p3, %p2107_p2 }
  0x2d   :  { %v193_v33 = vsub.f32 %v2203_v18, %v192_v24  ;;  %1620 = vmatprep.subr.mxu0 %v2133_v0  ;;  %v200_v39 = vsub.f32 %v2207_v20, %v199_v27  ;;  %v207_v42 = vsub.f32 %v2210_v21, %v206_v29  ;;  %v2252_v43 = vsub.f32 %v69_v14, %v2216_v25 }
  0x2e   :  { %1621 = vmatpush3.msra.mxu0 %v2187_v10  ;;  %v180_v37 = vand.u32 4294901760, %v179_v31  ;;  %v187_v38 = vand.u32 4294901760, %v186_v32  ;;  %v2255_v45 = vand.u32 4294901760, %v66_v36  ;;  %v220_v46 = vand.u32 4294901760, %v2237_v34  ;;  %p2110_p5 = pnand %p2109_p4, %p2103_p1 }
  0x2f   :  { %1622 = vmatprep.subr.mxu0 %v2133_v0  ;;  %v194_v44 = vand.u32 4294901760, %v193_v33  ;;  %v2259_v47 = vsub.f32 %v68_v19, %v2220_v28  ;;  %v2263_v48 = vand.u32 4294901760, %v65_v41  ;;  %v201_v51 = vand.u32 4294901760, %v200_v39 }
  0x30   :  { %1623 = vmatpush3.msra.mxu0 %v2189_v11  ;;  %1650 = vmatpush3.msra.mxu1 %v180_v37  ;;  %v214_v52 = vsub.f32 %v2224_v30, %v213_v40  ;;  %v227_v53 = vand.u32 4294901760, %v2252_v43  ;;  %v2271_v55 = vsub.f32 %v67_v26, %v2240_v35  ;;  %v208_v56 = vand.u32 4294901760, %v207_v42 }
  0x31   :  { %1624 = vmatprep.subr.mxu0 %v2133_v0  ;;  %1651 = vmatprep.subr.mxu1 %v2133_v0  ;;  %v234_v57 = vand.u32 4294901760, %v2259_v47  ;;  %v221_v58 = vsub.f32 %v2237_v34, %v220_v46  ;;  %v2280_v59 = vand.u32 4294901760, %v64_v49  ;;  %v2283_v61 = vsub.f32 %v66_v36, %v2255_v45 }
  0x32   :  { %1625 = vmatpush3.msra.mxu0 %v2191_v12  ;;  %1652 = vmatpush3.msra.mxu1 %v187_v38  ;;  %v2285_v62 = vand.u32 4294901760, %v60_v50  ;;  %v2289_v63 = vand.u32 4294901760, %v63_v54  ;;  %v215_v1 = vand.u32 4294901760, %v214_v52  ;;  %v228_v2 = vsub.f32 %v2252_v43, %v227_v53 }
  0x33   :  { %1626 = vmatprep.subr.mxu0 %v2133_v0  ;;  %1653 = vmatprep.subr.mxu1 %v2133_v0  ;;  %v241_v3 = vand.u32 4294901760, %v2271_v55  ;;  %v2297_v8 = vsub.f32 %v65_v41, %v2263_v48  ;;  %v235_v9 = vsub.f32 %v2259_v47, %v234_v57  ;;  %v2304_v13 = vand.u32 4294901760, %v62_v60 }
  0x34   :  { %1627 = vmatpush3.msra.mxu0 %v2200_v17  ;;  %1654 = vmatpush3.msra.mxu1 %v194_v44  ;;  %v222_v14 = vand.u32 4294901760, %v221_v58  ;;  %v248_v19 = vand.u32 4294901760, %v2283_v61  ;;  %v2309_v26 = vsub.f32 %v60_v50, %v2285_v62  ;;  %v2312_v31 = vsub.f32 %v64_v49, %v2280_v59 }
  0x35   :  { %1628 = vmatprep.subr.mxu0 %v2133_v0  ;;  %1655 = vmatprep.subr.mxu1 %v2133_v0  ;;  %v2316_v32 = vand.u32 4294901760, %v61_v7  ;;  %v229_v33 = vand.u32 4294901760, %v228_v2  ;;  %v242_v36 = vsub.f32 %v2271_v55, %v241_v3  ;;  %v255_v37 = vand.u32 4294901760, %v2297_v8 }
  0x36   :  { %1629 = vmatpush3.msra.mxu0 %v2216_v25  ;;  %1656 = vmatpush3.msra.mxu1 %v201_v51  ;;  %v2324_v38 = vsub.f32 %v63_v54, %v2289_v63  ;;  %v236_v39 = vand.u32 4294901760, %v235_v9  ;;  %v249_v41 = vsub.f32 %v2283_v61, %v248_v19  ;;  %v167_v42 = vand.u32 4294901760, %v2309_v26 }
  0x37   :  { %1630 = vmatprep.subr.mxu0 %v2133_v0  ;;  %1657 = vmatprep.subr.mxu1 %v2133_v0  ;;  %v262_v44 = vand.u32 4294901760, %v2312_v31  ;;  %v2335_v49 = vsub.f32 %v62_v60, %v2304_v13  ;;  %v243_v50 = vand.u32 4294901760, %v242_v36  ;;  %v256_v51 = vsub.f32 %v2297_v8, %v255_v37 }
  0x38   :  { %1631 = vmatpush3.msra.mxu0 %v2220_v28  ;;  %1658 = vmatpush3.msra.mxu1 %v208_v56  ;;  %v269_v52 = vand.u32 4294901760, %v2324_v38  ;;  %v2345_v54 = vsub.f32 %v61_v7, %v2316_v32  ;;  %v250_v56 = vand.u32 4294901760, %v249_v41  ;;  %v168_v58 = vsub.f32 %v2309_v26, %v167_v42 }
  0x39   :  { %1632 = vmatprep.subr.mxu0 %v2133_v0  ;;  %1659 = vmatprep.subr.mxu1 %v2133_v0  ;;  %v263_v60 = vsub.f32 %v2312_v31, %v262_v44  ;;  %v257_v2 = vand.u32 4294901760, %v256_v51 }
  0x3a   :  { %1633 = vmatpush3.msra.mxu0 %v2240_v35  ;;  %1660 = vmatpush3.msra.mxu1 %v215_v1  ;;  %v276_v1 = vand.u32 4294901760, %v2335_v49  ;;  %v270_v7 = vsub.f32 %v2324_v38, %v269_v52  ;;  %v283_v9 = vand.u32 4294901760, %v2345_v54 }
  0x3b   :  { %1634 = vmatprep.subr.mxu0 %v2133_v0  ;;  %1661 = vmatprep.subr.mxu1 %v2133_v0 }
  0x3c   :  { %1635 = vmatpush3.msra.mxu0 %v2255_v45  ;;  %1662 = vmatpush3.msra.mxu1 %v222_v14  ;;  %v169_v14 = vand.u32 4294901760, %v168_v58  ;;  %v277_v36 = vsub.f32 %v2335_v49, %v276_v1  ;;  %v284_v41 = vsub.f32 %v2345_v54, %v283_v9  ;;  %v732_v58 = vld [vmem:[#allocation7 + $0x30] sm:$0xff] }
  0x3d   :  { %1636 = vmatprep.subr.mxu0 %v2133_v0  ;;  %1663 = vmatprep.subr.mxu1 %v2133_v0 }
  0x3e   :  { %1637 = vmatpush3.msra.mxu0 %v2263_v48  ;;  %1664 = vmatpush3.msra.mxu1 %v229_v33  ;;  %v264_v33 = vand.u32 4294901760, %v263_v60  ;;  %v285_v51 = vand.u32 4294901760, %v284_v41 }
  0x3f   :  { %1638 = vmatprep.subr.mxu0 %v2133_v0  ;;  %1665 = vmatprep.subr.mxu1 %v2133_v0 }
  0x40   :  { %1639 = vmatpush3.msra.mxu0 %v2280_v59  ;;  %1666 = vmatpush3.msra.mxu1 %v236_v39  ;;  %v271_v39 = vand.u32 4294901760, %v270_v7  ;;  %v731_v7 = vld [vmem:[#allocation7 + $0x28] sm:$0xff] }
  0x41   :  { %1640 = vmatprep.subr.mxu0 %v2133_v0  ;;  %1667 = vmatprep.subr.mxu1 %v2133_v0 }
  0x42   :  { %1641 = vmatpush3.msra.mxu0 %v2289_v63  ;;  %1668 = vmatpush3.msra.mxu1 %v243_v50  ;;  %v278_v50 = vand.u32 4294901760, %v277_v36  ;;  %v730_v36 = vld [vmem:[#allocation7 + $0x20] sm:$0xff] }
  0x43   :  { %1642 = vmatprep.subr.mxu0 %v2133_v0  ;;  %1669 = vmatprep.subr.mxu1 %v2133_v0 }
  0x44   :  { %1643 = vmatpush3.msra.mxu0 %v2304_v13  ;;  %1670 = vmatpush3.msra.mxu1 %v250_v56 }
  0x45   :  { %1644 = vmatprep.subr.mxu0 %v2133_v0  ;;  %1671 = vmatprep.subr.mxu1 %v2133_v0 }
  0x46   :  { %1645 = vmatpush3.msra.mxu0 %v2316_v32  ;;  %1672 = vmatpush3.msra.mxu1 %v257_v2  ;;  %v2644_v2 = vand.u32 4294901760, %v732_v58 }
  0x47   :  { %1673 = vmatprep.subr.mxu1 %v2133_v0  ;;  %1684 = vmatprep.subr.mxu0 %v2133_v0 }
  0x48   :  { %1647 = vmatmul.mubr.f32.vlgmr.msra.gmra.mxu0 %v169_v14  ;;  %1674 = vmatpush3.msra.mxu1 %v264_v33  ;;  %v2650_v14 = vsub.f32 %v732_v58, %v2644_v2  ;;  %v2652_v33 = vand.u32 4294901760, %v731_v7 }
  0x49   :  { %1685 = vmatpush3.msra.mxu0 %v2195_v15  ;;  %1675 = vmatprep.subr.mxu1 %v2133_v0  ;;  %v738_v15 = vld [vmem:[#allocation7 + $0x60] sm:$0xff] }
  0x4a   :  { %1686 = vmatprep.subr.mxu0 %v2133_v0  ;;  %1676 = vmatpush3.msra.mxu1 %v271_v39  ;;  %v906_v41 = vand.u32 4294901760, %v2650_v14 }
  0x4b   :  { %1687 = vmatpush3.msra.mxu0 %v2198_v16  ;;  %1677 = vmatprep.subr.mxu1 %v2133_v0  ;;  %v737_v16 = vld [vmem:[#allocation7 + $0x58] sm:$0xff] }
  0x4c   :  { %1688 = vmatprep.subr.mxu0 %v2133_v0  ;;  %1678 = vmatpush3.msra.mxu1 %v278_v50  ;;  %v2659_v50 = vsub.f32 %v731_v7, %v2652_v33 }
  0x4d   :  { %1689 = vmatpush3.msra.mxu0 %v2203_v18  ;;  %1679 = vmatprep.subr.mxu1 %v2133_v0 }
  0x4e   :  { %1690 = vmatprep.subr.mxu0 %v2133_v0  ;;  %1680 = vmatpush3.msra.mxu1 %v285_v51  ;;  %v2661_v51 = vand.u32 4294901760, %v730_v36 }
  0x4f   :  { %1691 = vmatpush3.msra.mxu0 %v2207_v20  ;;  %1682 = vmatmul.mubr.f32.vlgmr.msra.gmra.mxu1 %v2285_v62 }
  0x50   :  { %1692 = vmatprep.subr.mxu0 %v2133_v0  ;;  %1719 = vmatprep.subr.mxu1 %v2133_v0 }
  0x51   :  { %1693 = vmatpush3.msra.mxu0 %v2210_v21  ;;  %1720 = vmatpush3.msra.mxu1 %v2181_v4  ;;  %v2559_v21 = vand.u32 4294901760, %v738_v15 }
  0x52   :  { %1694 = vmatprep.subr.mxu0 %v2133_v0  ;;  %1721 = vmatprep.subr.mxu1 %v2133_v0 }
  0x53   :  { %1695 = vmatpush3.msra.mxu0 %v2224_v30  ;;  %1722 = vmatpush3.msra.mxu1 %v2183_v5 }
  0x54   :  { %1696 = vmatprep.subr.mxu0 %v2133_v0  ;;  %1723 = vmatprep.subr.mxu1 %v2133_v0 }
  0x55   :  { %1697 = vmatpush3.msra.mxu0 %v2237_v34  ;;  %1724 = vmatpush3.msra.mxu1 %v2185_v6 }
  0x56   :  { %1698 = vmatprep.subr.mxu0 %v2133_v0  ;;  %1725 = vmatprep.subr.mxu1 %v2133_v0 }
  0x57   :  { %1699 = vmatpush3.msra.mxu0 %v2252_v43  ;;  %1726 = vmatpush3.msra.mxu1 %v2187_v10 }
  0x58   :  { %1700 = vmatprep.subr.mxu0 %v2133_v0  ;;  %1727 = vmatprep.subr.mxu1 %v2133_v0 }
  0x59   :  { %1701 = vmatpush3.msra.mxu0 %v2259_v47  ;;  %1728 = vmatpush3.msra.mxu1 %v2189_v11 }
  0x5a   :  { %1702 = vmatprep.subr.mxu0 %v2133_v0  ;;  %1729 = vmatprep.subr.mxu1 %v2133_v0 }
  0x5b   :  { %1703 = vmatpush3.msra.mxu0 %v2271_v55  ;;  %1730 = vmatpush3.msra.mxu1 %v2191_v12 }
  0x5c   :  { %1704 = vmatprep.subr.mxu0 %v2133_v0  ;;  %1731 = vmatprep.subr.mxu1 %v2133_v0 }
  0x5d   :  { %1705 = vmatpush3.msra.mxu0 %v2283_v61  ;;  %1732 = vmatpush3.msra.mxu1 %v2200_v17 }
  0x5e   :  { %1706 = vmatprep.subr.mxu0 %v2133_v0  ;;  %1733 = vmatprep.subr.mxu1 %v2133_v0 }
  0x5f   :  { %1707 = vmatpush3.msra.mxu0 %v2297_v8  ;;  %1734 = vmatpush3.msra.mxu1 %v2216_v25 }
  0x60   :  { %1708 = vmatprep.subr.mxu0 %v2133_v0  ;;  %1735 = vmatprep.subr.mxu1 %v2133_v0 }
  0x61   :  { %1709 = vmatpush3.msra.mxu0 %v2312_v31  ;;  %1736 = vmatpush3.msra.mxu1 %v2220_v28 }
  0x62   :  { %1710 = vmatprep.subr.mxu0 %v2133_v0  ;;  %1737 = vmatprep.subr.mxu1 %v2133_v0 }
  0x63   :  { %1711 = vmatpush3.msra.mxu0 %v2324_v38  ;;  %1738 = vmatpush3.msra.mxu1 %v2240_v35 }
  0x64   :  { %1712 = vmatprep.subr.mxu0 %v2133_v0  ;;  %1739 = vmatprep.subr.mxu1 %v2133_v0 }
  0x65   :  { %1713 = vmatpush3.msra.mxu0 %v2335_v49  ;;  %1740 = vmatpush3.msra.mxu1 %v2255_v45 }
  0x66   :  { %1714 = vmatprep.subr.mxu0 %v2133_v0  ;;  %1741 = vmatprep.subr.mxu1 %v2133_v0 }
  0x67   :  { %1715 = vmatpush3.msra.mxu0 %v2345_v54  ;;  %1716 = vmatprep.mubr.msk.f32.mxu0 %vm2134_vm0, %v2133_v0 }
  0x68   :  { %1742 = vmatpush3.msra.mxu1 %v2263_v48  ;;  %1717 = vmatmul.mubr.f32.vlgmr.msra.gmra.mxu0 %v2309_v26 }
  0x69   :  { %1743 = vmatprep.subr.mxu1 %v2133_v0  ;;  %1754 = vmatprep.subr.mxu0 %v2133_v0 }
  0x6a   :  { %1744 = vmatpush3.msra.mxu1 %v2280_v59  ;;  %1755 = vmatpush3.msra.mxu0 %v178_v22  ;;  %v736_v22 = vld [vmem:[#allocation7 + $0x50] sm:$0xff] }
  0x6b   :  { %1745 = vmatprep.subr.mxu1 %v2133_v0  ;;  %1756 = vmatprep.subr.mxu0 %v2133_v0 }
  0x6c   :  { %1746 = vmatpush3.msra.mxu1 %v2289_v63  ;;  %1757 = vmatpush3.msra.mxu0 %v185_v23  ;;  %v735_v23 = vld [vmem:[#allocation7 + $0x48] sm:$0xff] }
  0x6d   :  { %1747 = vmatprep.subr.mxu1 %v2133_v0  ;;  %1758 = vmatprep.subr.mxu0 %v2133_v0 }
  0x6e   :  { %1748 = vmatpush3.msra.mxu1 %v2304_v13  ;;  %1759 = vmatpush3.msra.mxu0 %v192_v24  ;;  %v734_v24 = vld [vmem:[#allocation7 + $0x40] sm:$0xff] }
  0x6f   :  { %1749 = vmatprep.subr.mxu1 %v2133_v0  ;;  %1760 = vmatprep.subr.mxu0 %v2133_v0 }
  0x70   :  { %1750 = vmatpush3.msra.mxu1 %v2316_v32  ;;  %1751 = vmatprep.mubr.msk.f32.mxu1 %vm2134_vm0, %v2133_v0 }
  0x71   :  { %1761 = vmatpush3.msra.mxu0 %v199_v27  ;;  %1752 = vmatmul.mubr.f32.vlgmr.msra.gmra.mxu1 %v167_v42  ;;  %v2564_v27 = vand.u32 4294901760, %v736_v22 }
  0x72   :  { %1762 = vmatprep.subr.mxu0 %v2133_v0  ;;  %1789 = vmatprep.subr.mxu1 %v2133_v0 }
  0x73   :  { %1763 = vmatpush3.msra.mxu0 %v206_v29  ;;  %1790 = vmatpush3.msra.mxu1 %v2181_v4  ;;  %v741_v4 = vld [vmem:[#allocation7 + $0x78] sm:$0xff]  ;;  %v2569_v29 = vand.u32 4294901760, %v734_v24 }
  0x74   :  { %1764 = vmatprep.subr.mxu0 %v2133_v0  ;;  %1791 = vmatprep.subr.mxu1 %v2133_v0 }
  0x75   :  { %1765 = vmatpush3.msra.mxu0 %v213_v40  ;;  %1792 = vmatpush3.msra.mxu1 %v2183_v5  ;;  %v2544_v5 = vand.u32 4294901760, %v741_v4  ;;  %v2579_v40 = vsub.f32 %v738_v15, %v2559_v21  ;;  %v2593_v47 = vsub.f32 %v734_v24, %v2569_v29  ;;  %v2671_v15 = vsub.f32 %v730_v36, %v2661_v51 }
  0x76   :  { %1766 = vmatprep.subr.mxu0 %v2133_v0  ;;  %1793 = vmatprep.subr.mxu1 %v2133_v0 }
  0x77   :  { %1767 = vmatpush3.msra.mxu0 %v220_v46  ;;  %1794 = vmatpush3.msra.mxu1 %v2185_v6  ;;  %v740_v6 = vld [vmem:[#allocation7 + $0x70] sm:$0xff]  ;;  %v892_v31 = vand.u32 4294901760, %v2593_v47 }
  0x78   :  { %1768 = vmatprep.subr.mxu0 %v2133_v0  ;;  %1795 = vmatprep.subr.mxu1 %v2133_v0 }
  0x79   :  { %1769 = vmatpush3.msra.mxu0 %v227_v53  ;;  %1796 = vmatpush3.msra.mxu1 %v2187_v10  ;;  %v2547_v10 = vsub.f32 %v741_v4, %v2544_v5  ;;  %v893_v56 = vsub.f32 %v2593_v47, %v892_v31  ;;  %v729_v4 = vld [vmem:[#allocation7 + $0x18] sm:$0xff] }
  0x7a   :  { %1770 = vmatprep.subr.mxu0 %v2133_v0  ;;  %1797 = vmatprep.subr.mxu1 %v2133_v0 }
  0x7b   :  { %1771 = vmatpush3.msra.mxu0 %v234_v57  ;;  %1798 = vmatpush3.msra.mxu1 %v2189_v11  ;;  %v2549_v11 = vand.u32 4294901760, %v740_v6 }
  0x7c   :  { %1772 = vmatprep.subr.mxu0 %v2133_v0  ;;  %1799 = vmatprep.subr.mxu1 %v2133_v0 }
  0x7d   :  { %1773 = vmatpush3.msra.mxu0 %v241_v3  ;;  %1800 = vmatpush3.msra.mxu1 %v2191_v12  ;;  %v739_v12 = vld [vmem:[#allocation7 + $0x68] sm:$0xff]  ;;  %v2555_v18 = vsub.f32 %v740_v6, %v2549_v11  ;;  %v907_v6 = vsub.f32 %v2650_v14, %v906_v41 }
  0x7e   :  { %1774 = vmatprep.subr.mxu0 %v2133_v0  ;;  %1801 = vmatprep.subr.mxu1 %v2133_v0  ;;  %v2557_v20 = vand.u32 4294901760, %v739_v12 }
  0x7f   :  { %1775 = vmatpush3.msra.mxu0 %v248_v19  ;;  %1802 = vmatpush3.msra.mxu1 %v2200_v17  ;;  %v843_v17 = vand.u32 4294901760, %v2547_v10  ;;  %v850_v34 = vand.u32 4294901760, %v2555_v18 }
  0x80   :  { %1776 = vmatprep.subr.mxu0 %v2133_v0  ;;  %1803 = vmatprep.subr.mxu1 %v2133_v0 }
  0x81   :  { %1777 = vmatpush3.msra.mxu0 %v255_v37  ;;  %1804 = vmatpush3.msra.mxu1 %v2216_v25  ;;  %v2562_v25 = vand.u32 4294901760, %v737_v16  ;;  %v844_v30 = vsub.f32 %v2547_v10, %v843_v17  ;;  %v851_v55 = vsub.f32 %v2555_v18, %v850_v34 }
  0x82   :  { %1778 = vmatprep.subr.mxu0 %v2133_v0  ;;  %1805 = vmatprep.subr.mxu1 %v2133_v0 }
  0x83   :  { %1779 = vmatpush3.msra.mxu0 %v262_v44  ;;  %1806 = vmatpush3.msra.mxu1 %v2220_v28  ;;  %v2567_v28 = vand.u32 4294901760, %v735_v23  ;;  %v2583_v43 = vsub.f32 %v737_v16, %v2562_v25  ;;  %v845_v53 = vand.u32 4294901760, %v844_v30  ;;  %v852_v3 = vand.u32 4294901760, %v851_v55  ;;  %v727_v55 = vld [vmem:[#allocation7 + $0x8] sm:$0xff] }
  0x84   :  { %1780 = vmatprep.subr.mxu0 %v2133_v0  ;;  %1807 = vmatprep.subr.mxu1 %v2133_v0  ;;  %v2673_v16 = vand.u32 4294901760, %v729_v4  ;;  %v920_v30 = vand.u32 4294901760, %v2671_v15 }
  0x85   :  { %1781 = vmatpush3.msra.mxu0 %v269_v52  ;;  %1808 = vmatpush3.msra.mxu1 %v2240_v35  ;;  %v2576_v35 = vsub.f32 %v739_v12, %v2557_v20  ;;  %v2589_v46 = vsub.f32 %v735_v23, %v2567_v28  ;;  %v871_v61 = vand.u32 4294901760, %v2583_v43  ;;  %v913_v12 = vand.u32 4294901760, %v2659_v50 }
  0x86   :  { %1782 = vmatprep.subr.mxu0 %v2133_v0  ;;  %1809 = vmatprep.subr.mxu1 %v2133_v0  ;;  %v908_v23 = vand.u32 4294901760, %v907_v6 }
  0x87   :  { %1783 = vmatpush3.msra.mxu0 %v276_v1  ;;  %1810 = vmatpush3.msra.mxu1 %v2255_v45  ;;  %v2586_v45 = vsub.f32 %v736_v22, %v2564_v27  ;;  %v857_v57 = vand.u32 4294901760, %v2576_v35  ;;  %v872_v26 = vsub.f32 %v2583_v43, %v871_v61  ;;  %v728_v22 = vld [vmem:[#allocation7 + $0x10] sm:$0xff]  ;;  %v914_v24 = vsub.f32 %v2659_v50, %v913_v12 }
  0x88   :  { %1784 = vmatprep.subr.mxu0 %v2133_v0  ;;  %1811 = vmatprep.subr.mxu1 %v2133_v0 }
  0x89   :  { %1785 = vmatpush3.msra.mxu0 %v283_v9  ;;  %1786 = vmatprep.mubr.msk.f32.mxu0 %vm2134_vm0, %v2133_v0  ;;  %v858_v8 = vsub.f32 %v2576_v35, %v857_v57  ;;  %v873_v44 = vand.u32 4294901760, %v872_v26  ;;  %v894_v9 = vand.u32 4294901760, %v893_v56  ;;  %v2694_v26 = vand.u32 4294901760, %v727_v55 }
  0x8a   :  { %1812 = vmatpush3.msra.mxu1 %v2263_v48  ;;  %1787 = vmatmul.mubr.f32.vlgmr.msra.gmra.mxu0 %v2285_v62  ;;  %v733_v48 = vld [vmem:[#allocation7 + $0x38] sm:$0xff] }
  0x8b   :  { %1813 = vmatprep.subr.mxu1 %v2133_v0  ;;  %1821 = vmatprep.mubr.msk.f32.mxu1 %vm2134_vm0, %v2133_v0  ;;  %v2612_v19 = vand.u32 4294901760, %v733_v48 }
  0x8c   :  { %1814 = vmatpush3.msra.mxu1 %v2280_v59  ;;  %1824 = vmatprep.subr.mxu0 %v2133_v0  ;;  %v864_v59 = vand.u32 4294901760, %v2579_v40 }
  0x8d   :  { %1815 = vmatprep.subr.mxu1 %v2133_v0  ;;  %1856 = vmatprep.mubr.msk.f32.mxu0 %vm2134_vm0, %v2133_v0  ;;  %v2623_v42 = vsub.f32 %v733_v48, %v2612_v19  ;;  %v2683_v48 = vsub.f32 %v729_v4, %v2673_v16 }
  0x8e   :  { %1816 = vmatpush3.msra.mxu1 %v2289_v63  ;;  %1825 = vmatpush3.msra.mxu0 %v2544_v5  ;;  %v885_v63 = vand.u32 4294901760, %v2589_v46 }
  0x8f   :  { %1817 = vmatprep.subr.mxu1 %v2133_v0  ;;  %1826 = vmatprep.subr.mxu0 %v2133_v0  ;;  %v899_v52 = vand.u32 4294901760, %v2623_v42 }
  0x90   :  { %1818 = vmatpush3.msra.mxu1 %v2304_v13  ;;  %1827 = vmatpush3.msra.mxu0 %v2549_v11  ;;  %v865_v13 = vsub.f32 %v2579_v40, %v864_v59  ;;  %v886_v49 = vsub.f32 %v2589_v46, %v885_v63 }
  0x91   :  { %1819 = vmatprep.subr.mxu1 %v2133_v0  ;;  %1828 = vmatprep.subr.mxu0 %v2133_v0  ;;  %v900_v1 = vsub.f32 %v2623_v42, %v899_v52 }
  0x92   :  { %1820 = vmatpush3.msra.mxu1 %v2316_v32  ;;  %1829 = vmatpush3.msra.mxu0 %v2557_v20  ;;  %v859_v32 = vand.u32 4294901760, %v858_v8  ;;  %v866_v37 = vand.u32 4294901760, %v865_v13  ;;  %v887_v60 = vand.u32 4294901760, %v886_v49  ;;  %v921_v8 = vsub.f32 %v2671_v15, %v920_v30 }
  0x93   :  { %1822 = vmatmul.mubr.f32.vlgmr.msra.gmra.mxu1 %v2285_v62  ;;  %1859 = vmatprep.subr.mxu1 %v2133_v0  ;;  %v878_v62 = vand.u32 4294901760, %v2586_v45  ;;  %v901_v39 = vand.u32 4294901760, %v900_v1  ;;  %v2915_v13 = vand.u32 4294901760, %v2683_v48  ;;  %v2706_v49 = vsub.f32 %v727_v55, %v2694_v26 }
  0x94   :  { %1891 = vmatprep.mubr.msk.f32.mxu1 %vm2134_vm0, %v2133_v0  ;;  %1830 = vmatprep.subr.mxu0 %v2133_v0 }
  0x95   :  { %1831 = vmatpush3.msra.mxu0 %v2559_v21  ;;  %1860 = vmatpush3.msra.mxu1 %v845_v53  ;;  %v879_v38 = vsub.f32 %v2586_v45, %v878_v62  ;;  %v2687_v53 = vand.u32 4294901760, %v728_v22 }
  0x96   :  { %1832 = vmatprep.subr.mxu0 %v2133_v0  ;;  %1861 = vmatprep.subr.mxu1 %v2133_v0 }
  0x97   :  { %1833 = vmatpush3.msra.mxu0 %v2562_v25  ;;  %1862 = vmatpush3.msra.mxu1 %v852_v3  ;;  %v880_v54 = vand.u32 4294901760, %v879_v38  ;;  %v915_v3 = vand.u32 4294901760, %v914_v24  ;;  %v922_v38 = vand.u32 4294901760, %v921_v8 }
  0x98   :  { %1834 = vmatprep.subr.mxu0 %v2133_v0  ;;  %1863 = vmatprep.subr.mxu1 %v2133_v0 }
  0x99   :  { %1835 = vmatpush3.msra.mxu0 %v2564_v27  ;;  %1864 = vmatpush3.msra.mxu1 %v859_v32  ;;  %v2699_v32 = vsub.f32 %v728_v22, %v2687_v53 }
  0x9a   :  { %1836 = vmatprep.subr.mxu0 %v2133_v0  ;;  %1865 = vmatprep.subr.mxu1 %v2133_v0 }
  0x9b   :  { %1837 = vmatpush3.msra.mxu0 %v2567_v28  ;;  %1866 = vmatpush3.msra.mxu1 %v866_v37  ;;  %v726_v37 = vld [vmem:[#allocation7] sm:$0xff]  ;;  %v2914_v56 = vand.u32 4294901760, %v2699_v32 }
  0x9c   :  { %1838 = vmatprep.subr.mxu0 %v2133_v0  ;;  %1867 = vmatprep.subr.mxu1 %v2133_v0 }
  0x9d   :  { %1839 = vmatpush3.msra.mxu0 %v2569_v29  ;;  %1868 = vmatpush3.msra.mxu1 %v873_v44  ;;  %v928_v44 = vsub.f32 %v2683_v48, %v2915_v13  ;;  %v935_v7 = vsub.f32 %v2699_v32, %v2914_v56 }
  0x9e   :  { %1840 = vmatprep.subr.mxu0 %v2133_v0  ;;  %1869 = vmatprep.subr.mxu1 %v2133_v0 }
  0x9f   :  { %1841 = vmatpush3.msra.mxu0 %v2612_v19  ;;  %1870 = vmatpush3.msra.mxu1 %v880_v54  ;;  %v2708_v54 = vand.u32 4294901760, %v726_v37  ;;  %v929_v58 = vand.u32 4294901760, %v928_v44 }
  0xa0   :  { %1842 = vmatprep.subr.mxu0 %v2133_v0  ;;  %1871 = vmatprep.subr.mxu1 %v2133_v0 }
  0xa1   :  { %1843 = vmatpush3.msra.mxu0 %v2644_v2  ;;  %1872 = vmatpush3.msra.mxu1 %v887_v60  ;;  %v2913_v60 = vand.u32 4294901760, %v2706_v49  ;;  %v2716_v1 = vsub.f32 %v726_v37, %v2708_v54 }
  0xa2   :  { %1844 = vmatprep.subr.mxu0 %v2133_v0  ;;  %1873 = vmatprep.subr.mxu1 %v2133_v0 }
  0xa3   :  { %1845 = vmatpush3.msra.mxu0 %v2652_v33  ;;  %1874 = vmatpush3.msra.mxu1 %v894_v9  ;;  %v942_v9 = vsub.f32 %v2706_v49, %v2913_v60  ;;  %v2912_v36 = vand.u32 4294901760, %v2716_v1 }
  0xa4   :  { %1846 = vmatprep.subr.mxu0 %v2133_v0  ;;  %1875 = vmatprep.subr.mxu1 %v2133_v0 }
  0xa5   :  { %1847 = vmatpush3.msra.mxu0 %v2661_v51  ;;  %1876 = vmatpush3.msra.mxu1 %v901_v39  ;;  %v936_v39 = vand.u32 4294901760, %v935_v7  ;;  %v943_v4 = vand.u32 4294901760, %v942_v9  ;;  %v949_v6 = vsub.f32 %v2716_v1, %v2912_v36 }
  0xa6   :  { %1848 = vmatprep.subr.mxu0 %v2133_v0  ;;  %1877 = vmatprep.subr.mxu1 %v2133_v0 }
  0xa7   :  { %1849 = vmatpush3.msra.mxu0 %v2673_v16  ;;  %1878 = vmatpush3.msra.mxu1 %v908_v23  ;;  %v950_v22 = vand.u32 4294901760, %v949_v6 }
  0xa8   :  { %1850 = vmatprep.subr.mxu0 %v2133_v0  ;;  %1879 = vmatprep.subr.mxu1 %v2133_v0 }
  0xa9   :  { %1851 = vmatpush3.msra.mxu0 %v2687_v53  ;;  %1880 = vmatpush3.msra.mxu1 %v915_v3 }
  0xaa   :  { %1852 = vmatprep.subr.mxu0 %v2133_v0  ;;  %1881 = vmatprep.subr.mxu1 %v2133_v0 }
  0xab   :  { %1853 = vmatpush3.msra.mxu0 %v2694_v26  ;;  %1882 = vmatpush3.msra.mxu1 %v922_v38 }
  0xac   :  { %1854 = vmatprep.subr.mxu0 %v2133_v0  ;;  %1883 = vmatprep.subr.mxu1 %v2133_v0 }
  0xad   :  { %1855 = vmatpush3.msra.mxu0 %v2708_v54  ;;  %1884 = vmatpush3.msra.mxu1 %v929_v58  ;;  %v1408_v58 = vld [vmem:[%s2908_s2] ss:$0 sm:$0xff] }
  0xae   :  { %1894 = vmatprep.subr.mxu0 %v2133_v0  ;;  %1885 = vmatprep.subr.mxu1 %v2133_v0 }
  0xaf   :  { %1886 = vmatpush3.msra.mxu1 %v936_v39 }
  0xb0   :  { %1887 = vmatprep.subr.mxu1 %v2133_v0 }
  0xb1   :  { %1888 = vmatpush3.msra.mxu1 %v943_v4 }
  0xb2   :  { %1889 = vmatprep.subr.mxu1 %v2133_v0 }
  0xb3   :  { %1890 = vmatpush3.msra.mxu1 %v950_v22 }
  0xb4   :  { %1929 = vmatprep.subr.mxu1 %v2133_v0 }
 0x108   :  { %v171_v23 = vpop.f32.mrf.mxu0 }
 0x109   :  { %v172_v7 = vadd.f32 %v1408_v58, %v171_v23 }
 0x10a   :  { %v1648_v24 = vpop.f32.mrf.mxu0 }
 0x10f   :  { %v322_v55 = vpop.f32.mrf.mxu1 }
 0x110   :  { %v323_v39 = vadd.f32 %v322_v55, %v172_v7 }
 0x111   :  { %v1683_v3 = vpop.f32.mrf.mxu1 }
 0x128   :  { %v426_v8 = vpop.f32.mrf.mxu0 }
 0x129   :  { %v427_v6 = vadd.f32 %v426_v8, %v323_v39 }
 0x12a   :  { %v1718_v37 = vpop.f32.mrf.mxu0 }
 0x131   :  { %v515_v38 = vpop.f32.mrf.mxu1 }
 0x132   :  { %v516_v22 = vadd.f32 %v515_v38, %v427_v6 }
 0x133   :  { %v1753_v44 = vpop.f32.mrf.mxu1 }
 0x14a   :  { %v634_v9 = vpop.f32.mrf.mxu0 }
 0x14b   :  { %v635_v36 = vadd.f32 %v634_v9, %v516_v22 }
 0x14c   :  { %v1788_v4 = vpop.f32.mrf.mxu0 }
 0x153   :  { %v721_v60 = vpop.f32.mrf.mxu1 }
 0x154   :  { %v722_v56 = vadd.f32 %v721_v60, %v635_v36 }
 0x155   :  { %v1823_v24 = vpop.f32.mrf.mxu1 }
 0x156   :  { %v725_v13 = vmax.f32 %v722_v56, 0.0 }
 0x158   :  { %v2739_v3 = vand.u32 4294901760, %v725_v13 }
 0x15a   :  { %v2742_v37 = vsub.f32 %v725_v13, %v2739_v3  ;;  %1892 = vmatmul.mubr.f32.vlgmr.msra.gmra.mxu1 %v2739_v3 }
 0x15b   :  { %1930 = vmatpush3.msra.mxu1 %v2544_v5  ;;  %1961 = vmatprep.mubr.msk.f32.mxu1 %vm2134_vm0, %v2133_v0 }
 0x15c   :  { %v832_v23 = vand.u32 4294901760, %v2742_v37  ;;  %1931 = vmatprep.subr.mxu1 %v2133_v0 }
 0x15d   :  { %1932 = vmatpush3.msra.mxu1 %v2549_v11 }
 0x15e   :  { %v833_v56 = vsub.f32 %v2742_v37, %v832_v23  ;;  %1933 = vmatprep.subr.mxu1 %v2133_v0 }
 0x15f   :  { %1934 = vmatpush3.msra.mxu1 %v2557_v20 }
 0x160   :  { %1935 = vmatprep.subr.mxu1 %v2133_v0  ;;  %v834_v13 = vand.u32 4294901760, %v833_v56 }
 0x161   :  { %1936 = vmatpush3.msra.mxu1 %v2559_v21 }
 0x162   :  { %1937 = vmatprep.subr.mxu1 %v2133_v0  ;;  %1857 = vmatmul.mubr.f32.vlgmr.msra.gmra.mxu0 %v834_v13 }
 0x163   :  { %1895 = vmatpush3.msra.mxu0 %v2547_v10  ;;  %1938 = vmatpush3.msra.mxu1 %v2562_v25  ;;  %v2917_v10 = vand.u32 4294901760, %v2699_v32 }
 0x164   :  { %1896 = vmatprep.subr.mxu0 %v2133_v0  ;;  %1939 = vmatprep.subr.mxu1 %v2133_v0 }
 0x165   :  { %1897 = vmatpush3.msra.mxu0 %v2555_v18  ;;  %1940 = vmatpush3.msra.mxu1 %v2564_v27 }
 0x166   :  { %1898 = vmatprep.subr.mxu0 %v2133_v0  ;;  %1941 = vmatprep.subr.mxu1 %v2133_v0 }
 0x167   :  { %1899 = vmatpush3.msra.mxu0 %v2576_v35  ;;  %1942 = vmatpush3.msra.mxu1 %v2567_v28  ;;  %v1409_v35 = vld [vmem:[%s2910_s4] ss:$0 sm:$0xff] }
 0x168   :  { %1900 = vmatprep.subr.mxu0 %v2133_v0  ;;  %1943 = vmatprep.subr.mxu1 %v2133_v0 }
 0x169   :  { %1901 = vmatpush3.msra.mxu0 %v2579_v40  ;;  %1944 = vmatpush3.msra.mxu1 %v2569_v29 }
 0x16a   :  { %1902 = vmatprep.subr.mxu0 %v2133_v0  ;;  %1945 = vmatprep.subr.mxu1 %v2133_v0 }
 0x16b   :  { %1903 = vmatpush3.msra.mxu0 %v2583_v43  ;;  %1946 = vmatpush3.msra.mxu1 %v2612_v19 }
 0x16c   :  { %1904 = vmatprep.subr.mxu0 %v2133_v0  ;;  %1947 = vmatprep.subr.mxu1 %v2133_v0 }
 0x16d   :  { %1905 = vmatpush3.msra.mxu0 %v2586_v45  ;;  %1948 = vmatpush3.msra.mxu1 %v2644_v2 }
 0x16e   :  { %1906 = vmatprep.subr.mxu0 %v2133_v0  ;;  %1949 = vmatprep.subr.mxu1 %v2133_v0 }
 0x16f   :  { %1907 = vmatpush3.msra.mxu0 %v2589_v46  ;;  %1950 = vmatpush3.msra.mxu1 %v2652_v33 }
 0x170   :  { %1908 = vmatprep.subr.mxu0 %v2133_v0  ;;  %1951 = vmatprep.subr.mxu1 %v2133_v0 }
 0x171   :  { %1909 = vmatpush3.msra.mxu0 %v2593_v47  ;;  %1952 = vmatpush3.msra.mxu1 %v2661_v51 }
 0x172   :  { %1910 = vmatprep.subr.mxu0 %v2133_v0  ;;  %1953 = vmatprep.subr.mxu1 %v2133_v0 }
 0x173   :  { %1911 = vmatpush3.msra.mxu0 %v2623_v42  ;;  %1954 = vmatpush3.msra.mxu1 %v2673_v16 }
 0x174   :  { %1912 = vmatprep.subr.mxu0 %v2133_v0  ;;  %1955 = vmatprep.subr.mxu1 %v2133_v0 }
 0x175   :  { %1913 = vmatpush3.msra.mxu0 %v2650_v14  ;;  %1956 = vmatpush3.msra.mxu1 %v2687_v53 }
 0x176   :  { %1914 = vmatprep.subr.mxu0 %v2133_v0  ;;  %1957 = vmatprep.subr.mxu1 %v2133_v0 }
 0x177   :  { %1915 = vmatpush3.msra.mxu0 %v2659_v50  ;;  %1958 = vmatpush3.msra.mxu1 %v2694_v26 }
 0x178   :  { %1916 = vmatprep.subr.mxu0 %v2133_v0  ;;  %1959 = vmatprep.subr.mxu1 %v2133_v0 }
 0x179   :  { %1917 = vmatpush3.msra.mxu0 %v2671_v15  ;;  %1960 = vmatpush3.msra.mxu1 %v2708_v54 }
 0x17a   :  { %1918 = vmatprep.subr.mxu0 %v2133_v0  ;;  %1962 = vmatmul.mubr.f32.vlgmr.msra.gmra.mxu1 %v832_v23 }
 0x17b   :  { %1999 = vmatprep.subr.mxu1 %v2133_v0  ;;  %1919 = vmatpush3.msra.mxu0 %v2683_v48 }
 0x17c   :  { %2000 = vmatpush3.msra.mxu1 %v2544_v5  ;;  %1920 = vmatprep.subr.mxu0 %v2133_v0  ;;  %v2916_v5 = vand.u32 4294901760, %v2683_v48 }
 0x17d   :  { %2001 = vmatprep.subr.mxu1 %v2133_v0  ;;  %1921 = vmatpush3.msra.mxu0 %v2699_v32 }
 0x17e   :  { %2002 = vmatpush3.msra.mxu1 %v2549_v11  ;;  %1922 = vmatprep.subr.mxu0 %v2133_v0  ;;  %v2918_v11 = vand.u32 4294901760, %v2706_v49 }
 0x17f   :  { %2003 = vmatprep.subr.mxu1 %v2133_v0  ;;  %1923 = vmatpush3.msra.mxu0 %v2706_v49 }
 0x180   :  { %2004 = vmatpush3.msra.mxu1 %v2557_v20  ;;  %1924 = vmatprep.subr.mxu0 %v2133_v0 }
 0x181   :  { %2005 = vmatprep.subr.mxu1 %v2133_v0  ;;  %1925 = vmatpush3.msra.mxu0 %v2716_v1 }
 0x182   :  { %1926 = vmatprep.mubr.msk.f32.mxu0 %vm2134_vm0, %v2133_v0  ;;  %2006 = vmatpush3.msra.mxu1 %v2559_v21 }
 0x183   :  { %1927 = vmatmul.mubr.f32.vlgmr.msra.gmra.mxu0 %v2742_v37  ;;  %1964 = vmatprep.subr.mxu0 %v2133_v0 }
 0x184   :  { %2007 = vmatprep.subr.mxu1 %v2133_v0  ;;  %1965 = vmatpush3.msra.mxu0 %v843_v17  ;;  %v2919_v17 = vand.u32 4294901760, %v2716_v1 }
 0x185   :  { %2008 = vmatpush3.msra.mxu1 %v2562_v25  ;;  %1966 = vmatprep.subr.mxu0 %v2133_v0 }
 0x186   :  { %2009 = vmatprep.subr.mxu1 %v2133_v0  ;;  %1967 = vmatpush3.msra.mxu0 %v850_v34 }
 0x187   :  { %2010 = vmatpush3.msra.mxu1 %v2564_v27  ;;  %1968 = vmatprep.subr.mxu0 %v2133_v0 }
 0x188   :  { %2011 = vmatprep.subr.mxu1 %v2133_v0  ;;  %1969 = vmatpush3.msra.mxu0 %v857_v57 }
 0x189   :  { %2012 = vmatpush3.msra.mxu1 %v2567_v28  ;;  %1970 = vmatprep.subr.mxu0 %v2133_v0 }
 0x18a   :  { %2013 = vmatprep.subr.mxu1 %v2133_v0  ;;  %1971 = vmatpush3.msra.mxu0 %v864_v59 }
 0x18b   :  { %2014 = vmatpush3.msra.mxu1 %v2569_v29  ;;  %1972 = vmatprep.subr.mxu0 %v2133_v0 }
 0x18c   :  { %2015 = vmatprep.subr.mxu1 %v2133_v0  ;;  %1973 = vmatpush3.msra.mxu0 %v871_v61 }
 0x18d   :  { %2016 = vmatpush3.msra.mxu1 %v2612_v19  ;;  %1974 = vmatprep.subr.mxu0 %v2133_v0 }
 0x18e   :  { %2017 = vmatprep.subr.mxu1 %v2133_v0  ;;  %1975 = vmatpush3.msra.mxu0 %v878_v62 }
 0x18f   :  { %2018 = vmatpush3.msra.mxu1 %v2644_v2  ;;  %1976 = vmatprep.subr.mxu0 %v2133_v0 }
 0x190   :  { %2019 = vmatprep.subr.mxu1 %v2133_v0  ;;  %1977 = vmatpush3.msra.mxu0 %v885_v63 }
 0x191   :  { %2020 = vmatpush3.msra.mxu1 %v2652_v33  ;;  %1978 = vmatprep.subr.mxu0 %v2133_v0 }
 0x192   :  { %2021 = vmatprep.subr.mxu1 %v2133_v0  ;;  %1979 = vmatpush3.msra.mxu0 %v892_v31 }
 0x193   :  { %2022 = vmatpush3.msra.mxu1 %v2661_v51  ;;  %1980 = vmatprep.subr.mxu0 %v2133_v0 }
 0x194   :  { %2023 = vmatprep.subr.mxu1 %v2133_v0  ;;  %1981 = vmatpush3.msra.mxu0 %v899_v52 }
 0x195   :  { %2024 = vmatpush3.msra.mxu1 %v2673_v16  ;;  %1982 = vmatprep.subr.mxu0 %v2133_v0 }
 0x196   :  { %2025 = vmatprep.subr.mxu1 %v2133_v0  ;;  %1983 = vmatpush3.msra.mxu0 %v906_v41 }
 0x197   :  { %2026 = vmatpush3.msra.mxu1 %v2687_v53  ;;  %1984 = vmatprep.subr.mxu0 %v2133_v0 }
 0x198   :  { %2027 = vmatprep.subr.mxu1 %v2133_v0  ;;  %1985 = vmatpush3.msra.mxu0 %v913_v12 }
 0x199   :  { %2028 = vmatpush3.msra.mxu1 %v2694_v26  ;;  %1986 = vmatprep.subr.mxu0 %v2133_v0 }
 0x19a   :  { %2029 = vmatprep.subr.mxu1 %v2133_v0  ;;  %1987 = vmatpush3.msra.mxu0 %v920_v30 }
 0x19b   :  { %2030 = vmatpush3.msra.mxu1 %v2708_v54  ;;  %2031 = vmatprep.mubr.msk.f32.mxu1 %vm2134_vm0, %v2133_v0 }
 0x19c   :  { %1988 = vmatprep.subr.mxu0 %v2133_v0  ;;  %2032 = vmatmul.mubr.f32.vlgmr.msra.gmra.mxu1 %v2739_v3 }
 0x19d   :  { %1989 = vmatpush3.msra.mxu0 %v2916_v5  ;;  %1996 = vmatprep.mubr.msk.f32.mxu0 %vm2134_vm0, %v2133_v0 }
 0x19e   :  { %1990 = vmatprep.subr.mxu0 %v2133_v0 }
 0x19f   :  { %1991 = vmatpush3.msra.mxu0 %v2917_v10 }
 0x1a0   :  { %1992 = vmatprep.subr.mxu0 %v2133_v0 }
 0x1a1   :  { %1993 = vmatpush3.msra.mxu0 %v2918_v11 }
 0x1a2   :  { %1994 = vmatprep.subr.mxu0 %v2133_v0 }
 0x1a3   :  { %1995 = vmatpush3.msra.mxu0 %v2919_v17 }
 0x1a4   :  { %1997 = vmatmul.mubr.f32.vlgmr.msra.gmra.mxu0 %v2739_v3 }
 0x21a   :  { %v987_v18 = vpop.f32.mrf.mxu1 }
 0x21c   :  { %v1893_v20 = vpop.f32.mrf.mxu1 }
 0x222   :  { %v836_v21 = vpop.f32.mrf.mxu0 }
 0x223   :  { %v837_v40 = vadd.f32 %v1409_v35, %v836_v21 }
 0x224   :  { %v1858_v25 = vpop.f32.mrf.mxu0 }
 0x225   :  { %v988_v0 = vadd.f32 %v987_v18, %v837_v40 }
 0x23a   :  { %v1180_v27 = vpop.f32.mrf.mxu1 }
 0x23c   :  { %v1963_v28 = vpop.f32.mrf.mxu1 }
 0x243   :  { %v1091_v29 = vpop.f32.mrf.mxu0 }
 0x244   :  { %v1092_v46 = vadd.f32 %v1091_v29, %v988_v0 }
 0x245   :  { %v1928_v34 = vpop.f32.mrf.mxu0 }
 0x246   :  { %v1181_v47 = vadd.f32 %v1180_v27, %v1092_v46 }
 0x25c   :  { %v1386_v43 = vpop.f32.mrf.mxu1 }
 0x25e   :  { %v2033_v45 = vpop.f32.mrf.mxu1 }
 0x264   :  { %v1299_v57 = vpop.f32.mrf.mxu0 }
 0x265   :  { %v1300_v59 = vadd.f32 %v1299_v57, %v1181_v47 }
 0x266   :  { %v1998_v61 = vpop.f32.mrf.mxu0 }
 0x267   :  { %v1387_v62 = vadd.f32 %v1386_v43, %v1300_v59 }
 0x269   :  { %v1390_v63 = vmax.f32 %v1387_v62, 0.0 }
 0x26b   :  { %1391 = vst [vmem:[#allocation8] sm:$0xff] %v1390_v63 }
 0x26c   :  { %2113 = shalt.err (!%p2110_p5)
}
 0x26d   :  { %1401 = dma.vmem_to_hbm [thread:$0]  %s1399_s11, 128, %s2911_s5, [#allocation4]  }
 0x26e   :  { %2126 = dma.done.wait [#allocation4], 128  }
 0x26f   :  { %2127 = vsyncadd [#allocation4], 4294967168 }
 0x270   :  { %1405 = vsyncpa [#allocation3], 1 }
 0x271   :  { %1406 = vsyncpa [#allocation6], 1 }
 0x272   :  { %1407 = vsyncpa [#allocation4], 1 }

// kernel: _forward_impl.1
= control target key start
LH: loop header
LB: loop body
LE: loop exit
PB: predicated region body
PF: predicated region fallthrough
CT: control target
= control target key end

     0   :  { %10 = vsyncpa [#allocation3], 0  ;;  %s2906_s0 = inlined_call_operand.hbm [shape: f32[8,128], index: 0, kind: input, shape index: {}]   ;;  %s2907_s1 = inlined_call_operand.hbm [shape: f32[128,128], index: 1, kind: input, shape index: {}]   ;;  %s2908_s2 = inlined_call_operand.vmem [shape: f32[1,128], index: 2, kind: input, shape index: {}]   ;;  %s2909_s3 = inlined_call_operand.hbm [shape: f32[128,128], index: 3, kind: input, shape index: {}]   ;;  %s2910_s4 = inlined_call_operand.vmem [shape: f32[1,128], index: 4, kind: input, shape index: {}]   ;;  %s2911_s5 = inlined_call_operand.hbm [shape: f32[8,128], index: 5, kind: output, shape index: {}]  }
   0x1   :  { %11 = vsyncpa [#allocation6], 0 }
   0x2   :  { %12 = vsyncpa [#allocation4], 0  ;;  %s2128_s18 = smov [#allocation5]  }
   0x3   :  { %s28_s19 = sshll.u32 %s2128_s18, 4  ;;  %s29_s19 = int_to_ptr.vmem [resolvable:$true] %s28_s19 }
   0x4   :  { %s2050_s20 = scalar_lea.vmem %s29_s19, 2048  ;;  %p2055_p1 = scmp.lt.s32.totalorder %s29_s19, %s29_s19 }
   0x5   :  { %p2051_p0 = scmp.ne.s32.totalorder %s29_s19, %s2050_s20  ;;  %p2056_p2 = scmp.lt.s32.totalorder %s2050_s20, %s2050_s20 }
   0x7   :  { %p2057_p3 = por %p2056_p2, %p2055_p1 }
   0x9   :  { %p2058_p4 = pnand %p2057_p3, %p2051_p0 }
   0xb   :  { %2061 = shalt.err (!%p2058_p4)
}
   0xc   :  { %s2129_s21 = smov 128   ;;  %s2130_s22 = smov 8  }
   0xd   :  { %34 = dma.hbm_to_vmem [thread:$0]  %s2907_s1, 2048, %s29_s19, [#allocation6], %s2129_s21, %s2129_s21, %s2130_s22  }
   0xe   :  { %s2131_s25 = smov [#allocation2]   ;;  %s2132_s27 = smov [#allocation7]  }
   0xf   :  { %s19_s26 = sshll.u32 %s2131_s25, 4  ;;  %s42_s28 = sshll.u32 %s2132_s27, 4  ;;  %s20_s26 = int_to_ptr.vmem [resolvable:$true] %s19_s26  ;;  %s43_s28 = int_to_ptr.vmem [resolvable:$true] %s42_s28 }
  0x10   :  { %s2070_s29 = scalar_lea.vmem %s20_s26, 128  ;;  %p2075_p6 = scmp.lt.s32.totalorder %s20_s26, %s20_s26 }
  0x11   :  { %p2071_p5 = scmp.ne.s32.totalorder %s20_s26, %s2070_s29  ;;  %p2076_p7 = scmp.lt.s32.totalorder %s2070_s29, %s2070_s29 }
  0x13   :  { %p2077_p8 = por %p2076_p7, %p2075_p6 }
  0x15   :  { %p2078_p9 = pnand %p2077_p8, %p2071_p5 }
  0x17   :  { %2081 = shalt.err (!%p2078_p9)
}
  0x18   :  { %22 = dma.hbm_to_vmem [thread:$0]  %s2906_s0, 128, %s20_s26, [#allocation3]  }
  0x19   :  { %s2090_s7 = scalar_lea.vmem %s43_s28, 2048  ;;  %p2095_p11 = scmp.lt.s32.totalorder %s43_s28, %s43_s28 }
  0x1a   :  { %p2091_p10 = scmp.ne.s32.totalorder %s43_s28, %s2090_s7  ;;  %p2096_p12 = scmp.lt.s32.totalorder %s2090_s7, %s2090_s7 }
  0x1c   :  { %p2097_p13 = por %p2096_p12, %p2095_p11 }
  0x1e   :  { %p2098_p0 = pnand %p2097_p13, %p2091_p10 }
  0x20   :  { %2101 = shalt.err (!%p2098_p0)
}
  0x21   :  { %48 = dma.hbm_to_vmem [thread:$0]  %s2909_s3, 2048, %s43_s28, [#allocation6], %s2129_s21, %s2129_s21, %s2130_s22  }
  0x22   :  { %2122 = dma.done.wait [#allocation3], 128  }
  0x23   :  { %2123 = vsyncadd [#allocation3], 4294967168 }
  0x24   :  { %2124 = dma.done.wait [#allocation6], 4096  }
  0x25   :  { %2125 = vsyncadd [#allocation6], 4294963200  ;;  %v2133_v0 = vmov 0.0   ;;  %vm2134_vm0 = vmmov 0   ;;  %v76_v1 = vld [vmem:[#allocation5 + $0x78] sm:$0xff]  ;;  %v75_v2 = vld [vmem:[#allocation5 + $0x70] sm:$0xff] }
  0x26   :  { %1614 = vmatprep.subr.mxu0 %v2133_v0  ;;  %1649 = vmatprep.subr.mxu1 %v2133_v0  ;;  %v74_v3 = vld [vmem:[#allocation5 + $0x68] sm:$0xff]  ;;  %v2181_v4 = vand.u32 4294901760, %v76_v1  ;;  %v2183_v5 = vand.u32 4294901760, %v75_v2  ;;  %v73_v7 = vld [vmem:[#allocation5 + $0x60] sm:$0xff]  ;;  %v72_v8 = vld [vmem:[#allocation5 + $0x58] sm:$0xff]  ;;  %s2135_s10 = smov [#allocation8]  }
  0x27   :  { %1646 = vmatprep.mubr.msk.f32.mxu0 %vm2134_vm0, %v2133_v0  ;;  %1681 = vmatprep.mubr.msk.f32.mxu1 %vm2134_vm0, %v2133_v0  ;;  %v2185_v6 = vand.u32 4294901760, %v74_v3  ;;  %v71_v9 = vld [vmem:[#allocation5 + $0x50] sm:$0xff]  ;;  %v2187_v10 = vand.u32 4294901760, %v73_v7  ;;  %v2189_v11 = vand.u32 4294901760, %v72_v8  ;;  %v70_v13 = vld [vmem:[#allocation5 + $0x48] sm:$0xff]  ;;  %v69_v14 = vld [vmem:[#allocation5 + $0x40] sm:$0xff] }
  0x28   :  { %v2191_v12 = vand.u32 4294901760, %v71_v9  ;;  %1615 = vmatpush3.msra.mxu0 %v2181_v4  ;;  %v2195_v15 = vsub.f32 %v76_v1, %v2181_v4  ;;  %v2198_v16 = vsub.f32 %v75_v2, %v2183_v5  ;;  %v2200_v17 = vand.u32 4294901760, %v70_v13  ;;  %v68_v19 = vld [vmem:[#allocation5 + $0x38] sm:$0xff]  ;;  %v67_v26 = vld [vmem:[#allocation5 + $0x30] sm:$0xff]  ;;  %v66_v36 = vld [vmem:[#allocation5 + $0x28] sm:$0xff]  ;;  %s1398_s11 = sshll.u32 %s2135_s10, 4  ;;  %s1399_s11 = int_to_ptr.vmem [resolvable:$true] %s1398_s11 }
  0x29   :  { %v2203_v18 = vsub.f32 %v74_v3, %v2185_v6  ;;  %1616 = vmatprep.subr.mxu0 %v2133_v0  ;;  %v2207_v20 = vsub.f32 %v73_v7, %v2187_v10  ;;  %v2210_v21 = vsub.f32 %v72_v8, %v2189_v11  ;;  %v2216_v25 = vand.u32 4294901760, %v69_v14  ;;  %v65_v41 = vld [vmem:[#allocation5 + $0x20] sm:$0xff]  ;;  %v64_v49 = vld [vmem:[#allocation5 + $0x18] sm:$0xff]  ;;  %v63_v54 = vld [vmem:[#allocation5 + $0x10] sm:$0xff]  ;;  %s2102_s12 = scalar_lea.vmem %s1399_s11, 128  ;;  %p2107_p2 = scmp.lt.s32.totalorder %s1399_s11, %s1399_s11 }
  0x2a   :  { %1617 = vmatpush3.msra.mxu0 %v2183_v5  ;;  %v178_v22 = vand.u32 4294901760, %v2195_v15  ;;  %v185_v23 = vand.u32 4294901760, %v2198_v16  ;;  %v2220_v28 = vand.u32 4294901760, %v68_v19  ;;  %v2224_v30 = vsub.f32 %v71_v9, %v2191_v12  ;;  %v60_v50 = vld [vmem:[#allocation2] sm:$0xff]  ;;  %v62_v60 = vld [vmem:[#allocation5 + $0x8] sm:$0xff]  ;;  %v61_v7 = vld [vmem:[#allocation5] sm:$0xff]  ;;  %p2103_p1 = scmp.ne.s32.totalorder %s1399_s11, %s2102_s12  ;;  %p2108_p3 = scmp.lt.s32.totalorder %s2102_s12, %s2102_s12 }
  0x2b   :  { %v192_v24 = vand.u32 4294901760, %v2203_v18  ;;  %1618 = vmatprep.subr.mxu0 %v2133_v0  ;;  %v199_v27 = vand.u32 4294901760, %v2207_v20  ;;  %v206_v29 = vand.u32 4294901760, %v2210_v21  ;;  %v2237_v34 = vsub.f32 %v70_v13, %v2200_v17 }
  0x2c   :  { %1619 = vmatpush3.msra.mxu0 %v2185_v6  ;;  %v179_v31 = vsub.f32 %v2195_v15, %v178_v22  ;;  %v186_v32 = vsub.f32 %v2198_v16, %v185_v23  ;;  %v2240_v35 = vand.u32 4294901760, %v67_v26  ;;  %v213_v40 = vand.u32 4294901760, %v2224_v30  ;;  %p2109_p4 = por %p2108_p3, %p2107_p2 }
  0x2d   :  { %v193_v33 = vsub.f32 %v2203_v18, %v192_v24  ;;  %1620 = vmatprep.subr.mxu0 %v2133_v0  ;;  %v200_v39 = vsub.f32 %v2207_v20, %v199_v27  ;;  %v207_v42 = vsub.f32 %v2210_v21, %v206_v29  ;;  %v2252_v43 = vsub.f32 %v69_v14, %v2216_v25 }
  0x2e   :  { %1621 = vmatpush3.msra.mxu0 %v2187_v10  ;;  %v180_v37 = vand.u32 4294901760, %v179_v31  ;;  %v187_v38 = vand.u32 4294901760, %v186_v32  ;;  %v2255_v45 = vand.u32 4294901760, %v66_v36  ;;  %v220_v46 = vand.u32 4294901760, %v2237_v34  ;;  %p2110_p5 = pnand %p2109_p4, %p2103_p1 }
  0x2f   :  { %1622 = vmatprep.subr.mxu0 %v2133_v0  ;;  %v194_v44 = vand.u32 4294901760, %v193_v33  ;;  %v2259_v47 = vsub.f32 %v68_v19, %v2220_v28  ;;  %v2263_v48 = vand.u32 4294901760, %v65_v41  ;;  %v201_v51 = vand.u32 4294901760, %v200_v39 }
  0x30   :  { %1623 = vmatpush3.msra.mxu0 %v2189_v11  ;;  %1650 = vmatpush3.msra.mxu1 %v180_v37  ;;  %v214_v52 = vsub.f32 %v2224_v30, %v213_v40  ;;  %v227_v53 = vand.u32 4294901760, %v2252_v43  ;;  %v2271_v55 = vsub.f32 %v67_v26, %v2240_v35  ;;  %v208_v56 = vand.u32 4294901760, %v207_v42 }
  0x31   :  { %1624 = vmatprep.subr.mxu0 %v2133_v0  ;;  %1651 = vmatprep.subr.mxu1 %v2133_v0  ;;  %v234_v57 = vand.u32 4294901760, %v2259_v47  ;;  %v221_v58 = vsub.f32 %v2237_v34, %v220_v46  ;;  %v2280_v59 = vand.u32 4294901760, %v64_v49  ;;  %v2283_v61 = vsub.f32 %v66_v36, %v2255_v45 }
  0x32   :  { %1625 = vmatpush3.msra.mxu0 %v2191_v12  ;;  %1652 = vmatpush3.msra.mxu1 %v187_v38  ;;  %v2285_v62 = vand.u32 4294901760, %v60_v50  ;;  %v2289_v63 = vand.u32 4294901760, %v63_v54  ;;  %v215_v1 = vand.u32 4294901760, %v214_v52  ;;  %v228_v2 = vsub.f32 %v2252_v43, %v227_v53 }
  0x33   :  { %1626 = vmatprep.subr.mxu0 %v2133_v0  ;;  %1653 = vmatprep.subr.mxu1 %v2133_v0  ;;  %v241_v3 = vand.u32 4294901760, %v2271_v55  ;;  %v2297_v8 = vsub.f32 %v65_v41, %v2263_v48  ;;  %v235_v9 = vsub.f32 %v2259_v47, %v234_v57  ;;  %v2304_v13 = vand.u32 4294901760, %v62_v60 }
  0x34   :  { %1627 = vmatpush3.msra.mxu0 %v2200_v17  ;;  %1654 = vmatpush3.msra.mxu1 %v194_v44  ;;  %v222_v14 = vand.u32 4294901760, %v221_v58  ;;  %v248_v19 = vand.u32 4294901760, %v2283_v61  ;;  %v2309_v26 = vsub.f32 %v60_v50, %v2285_v62  ;;  %v2312_v31 = vsub.f32 %v64_v49, %v2280_v59 }
  0x35   :  { %1628 = vmatprep.subr.mxu0 %v2133_v0  ;;  %1655 = vmatprep.subr.mxu1 %v2133_v0  ;;  %v2316_v32 = vand.u32 4294901760, %v61_v7  ;;  %v229_v33 = vand.u32 4294901760, %v228_v2  ;;  %v242_v36 = vsub.f32 %v2271_v55, %v241_v3  ;;  %v255_v37 = vand.u32 4294901760, %v2297_v8 }
  0x36   :  { %1629 = vmatpush3.msra.mxu0 %v2216_v25  ;;  %1656 = vmatpush3.msra.mxu1 %v201_v51  ;;  %v2324_v38 = vsub.f32 %v63_v54, %v2289_v63  ;;  %v236_v39 = vand.u32 4294901760, %v235_v9  ;;  %v249_v41 = vsub.f32 %v2283_v61, %v248_v19  ;;  %v167_v42 = vand.u32 4294901760, %v2309_v26 }
  0x37   :  { %1630 = vmatprep.subr.mxu0 %v2133_v0  ;;  %1657 = vmatprep.subr.mxu1 %v2133_v0  ;;  %v262_v44 = vand.u32 4294901760, %v2312_v31  ;;  %v2335_v49 = vsub.f32 %v62_v60, %v2304_v13  ;;  %v243_v50 = vand.u32 4294901760, %v242_v36  ;;  %v256_v51 = vsub.f32 %v2297_v8, %v255_v37 }
  0x38   :  { %1631 = vmatpush3.msra.mxu0 %v2220_v28  ;;  %1658 = vmatpush3.msra.mxu1 %v208_v56  ;;  %v269_v52 = vand.u32 4294901760, %v2324_v38  ;;  %v2345_v54 = vsub.f32 %v61_v7, %v2316_v32  ;;  %v250_v56 = vand.u32 4294901760, %v249_v41  ;;  %v168_v58 = vsub.f32 %v2309_v26, %v167_v42 }
  0x39   :  { %1632 = vmatprep.subr.mxu0 %v2133_v0  ;;  %1659 = vmatprep.subr.mxu1 %v2133_v0  ;;  %v263_v60 = vsub.f32 %v2312_v31, %v262_v44  ;;  %v257_v2 = vand.u32 4294901760, %v256_v51 }
  0x3a   :  { %1633 = vmatpush3.msra.mxu0 %v2240_v35  ;;  %1660 = vmatpush3.msra.mxu1 %v215_v1  ;;  %v276_v1 = vand.u32 4294901760, %v2335_v49  ;;  %v270_v7 = vsub.f32 %v2324_v38, %v269_v52  ;;  %v283_v9 = vand.u32 4294901760, %v2345_v54 }
  0x3b   :  { %1634 = vmatprep.subr.mxu0 %v2133_v0  ;;  %1661 = vmatprep.subr.mxu1 %v2133_v0 }
  0x3c   :  { %1635 = vmatpush3.msra.mxu0 %v2255_v45  ;;  %1662 = vmatpush3.msra.mxu1 %v222_v14  ;;  %v169_v14 = vand.u32 4294901760, %v168_v58  ;;  %v277_v36 = vsub.f32 %v2335_v49, %v276_v1  ;;  %v284_v41 = vsub.f32 %v2345_v54, %v283_v9  ;;  %v732_v58 = vld [vmem:[#allocation7 + $0x30] sm:$0xff] }
  0x3d   :  { %1636 = vmatprep.subr.mxu0 %v2133_v0  ;;  %1663 = vmatprep.subr.mxu1 %v2133_v0 }
  0x3e   :  { %1637 = vmatpush3.msra.mxu0 %v2263_v48  ;;  %1664 = vmatpush3.msra.mxu1 %v229_v33  ;;  %v264_v33 = vand.u32 4294901760, %v263_v60  ;;  %v285_v51 = vand.u32 4294901760, %v284_v41 }
  0x3f   :  { %1638 = vmatprep.subr.mxu0 %v2133_v0  ;;  %1665 = vmatprep.subr.mxu1 %v2133_v0 }
  0x40   :  { %1639 = vmatpush3.msra.mxu0 %v2280_v59  ;;  %1666 = vmatpush3.msra.mxu1 %v236_v39  ;;  %v271_v39 = vand.u32 4294901760, %v270_v7  ;;  %v731_v7 = vld [vmem:[#allocation7 + $0x28] sm:$0xff] }
  0x41   :  { %1640 = vmatprep.subr.mxu0 %v2133_v0  ;;  %1667 = vmatprep.subr.mxu1 %v2133_v0 }
  0x42   :  { %1641 = vmatpush3.msra.mxu0 %v2289_v63  ;;  %1668 = vmatpush3.msra.mxu1 %v243_v50  ;;  %v278_v50 = vand.u32 4294901760, %v277_v36  ;;  %v730_v36 = vld [vmem:[#allocation7 + $0x20] sm:$0xff] }
  0x43   :  { %1642 = vmatprep.subr.mxu0 %v2133_v0  ;;  %1669 = vmatprep.subr.mxu1 %v2133_v0 }
  0x44   :  { %1643 = vmatpush3.msra.mxu0 %v2304_v13  ;;  %1670 = vmatpush3.msra.mxu1 %v250_v56 }
  0x45   :  { %1644 = vmatprep.subr.mxu0 %v2133_v0  ;;  %1671 = vmatprep.subr.mxu1 %v2133_v0 }
  0x46   :  { %1645 = vmatpush3.msra.mxu0 %v2316_v32  ;;  %1672 = vmatpush3.msra.mxu1 %v257_v2  ;;  %v2644_v2 = vand.u32 4294901760, %v732_v58 }
  0x47   :  { %1673 = vmatprep.subr.mxu1 %v2133_v0  ;;  %1684 = vmatprep.subr.mxu0 %v2133_v0 }
  0x48   :  { %1647 = vmatmul.mubr.f32.vlgmr.msra.gmra.mxu0 %v169_v14  ;;  %1674 = vmatpush3.msra.mxu1 %v264_v33  ;;  %v2650_v14 = vsub.f32 %v732_v58, %v2644_v2  ;;  %v2652_v33 = vand.u32 4294901760, %v731_v7 }
  0x49   :  { %1685 = vmatpush3.msra.mxu0 %v2195_v15  ;;  %1675 = vmatprep.subr.mxu1 %v2133_v0  ;;  %v738_v15 = vld [vmem:[#allocation7 + $0x60] sm:$0xff] }
  0x4a   :  { %1686 = vmatprep.subr.mxu0 %v2133_v0  ;;  %1676 = vmatpush3.msra.mxu1 %v271_v39  ;;  %v906_v41 = vand.u32 4294901760, %v2650_v14 }
  0x4b   :  { %1687 = vmatpush3.msra.mxu0 %v2198_v16  ;;  %1677 = vmatprep.subr.mxu1 %v2133_v0  ;;  %v737_v16 = vld [vmem:[#allocation7 + $0x58] sm:$0xff] }
  0x4c   :  { %1688 = vmatprep.subr.mxu0 %v2133_v0  ;;  %1678 = vmatpush3.msra.mxu1 %v278_v50  ;;  %v2659_v50 = vsub.f32 %v731_v7, %v2652_v33 }
  0x4d   :  { %1689 = vmatpush3.msra.mxu0 %v2203_v18  ;;  %1679 = vmatprep.subr.mxu1 %v2133_v0 }
  0x4e   :  { %1690 = vmatprep.subr.mxu0 %v2133_v0  ;;  %1680 = vmatpush3.msra.mxu1 %v285_v51  ;;  %v2661_v51 = vand.u32 4294901760, %v730_v36 }
  0x4f   :  { %1691 = vmatpush3.msra.mxu0 %v2207_v20  ;;  %1682 = vmatmul.mubr.f32.vlgmr.msra.gmra.mxu1 %v2285_v62 }
  0x50   :  { %1692 = vmatprep.subr.mxu0 %v2133_v0  ;;  %1719 = vmatprep.subr.mxu1 %v2133_v0 }
  0x51   :  { %1693 = vmatpush3.msra.mxu0 %v2210_v21  ;;  %1720 = vmatpush3.msra.mxu1 %v2181_v4  ;;  %v2559_v21 = vand.u32 4294901760, %v738_v15 }
  0x52   :  { %1694 = vmatprep.subr.mxu0 %v2133_v0  ;;  %1721 = vmatprep.subr.mxu1 %v2133_v0 }
  0x53   :  { %1695 = vmatpush3.msra.mxu0 %v2224_v30  ;;  %1722 = vmatpush3.msra.mxu1 %v2183_v5 }
  0x54   :  { %1696 = vmatprep.subr.mxu0 %v2133_v0  ;;  %1723 = vmatprep.subr.mxu1 %v2133_v0 }
  0x55   :  { %1697 = vmatpush3.msra.mxu0 %v2237_v34  ;;  %1724 = vmatpush3.msra.mxu1 %v2185_v6 }
  0x56   :  { %1698 = vmatprep.subr.mxu0 %v2133_v0  ;;  %1725 = vmatprep.subr.mxu1 %v2133_v0 }
  0x57   :  { %1699 = vmatpush3.msra.mxu0 %v2252_v43  ;;  %1726 = vmatpush3.msra.mxu1 %v2187_v10 }
  0x58   :  { %1700 = vmatprep.subr.mxu0 %v2133_v0  ;;  %1727 = vmatprep.subr.mxu1 %v2133_v0 }
  0x59   :  { %1701 = vmatpush3.msra.mxu0 %v2259_v47  ;;  %1728 = vmatpush3.msra.mxu1 %v2189_v11 }
  0x5a   :  { %1702 = vmatprep.subr.mxu0 %v2133_v0  ;;  %1729 = vmatprep.subr.mxu1 %v2133_v0 }
  0x5b   :  { %1703 = vmatpush3.msra.mxu0 %v2271_v55  ;;  %1730 = vmatpush3.msra.mxu1 %v2191_v12 }
  0x5c   :  { %1704 = vmatprep.subr.mxu0 %v2133_v0  ;;  %1731 = vmatprep.subr.mxu1 %v2133_v0 }
  0x5d   :  { %1705 = vmatpush3.msra.mxu0 %v2283_v61  ;;  %1732 = vmatpush3.msra.mxu1 %v2200_v17 }
  0x5e   :  { %1706 = vmatprep.subr.mxu0 %v2133_v0  ;;  %1733 = vmatprep.subr.mxu1 %v2133_v0 }
  0x5f   :  { %1707 = vmatpush3.msra.mxu0 %v2297_v8  ;;  %1734 = vmatpush3.msra.mxu1 %v2216_v25 }
  0x60   :  { %1708 = vmatprep.subr.mxu0 %v2133_v0  ;;  %1735 = vmatprep.subr.mxu1 %v2133_v0 }
  0x61   :  { %1709 = vmatpush3.msra.mxu0 %v2312_v31  ;;  %1736 = vmatpush3.msra.mxu1 %v2220_v28 }
  0x62   :  { %1710 = vmatprep.subr.mxu0 %v2133_v0  ;;  %1737 = vmatprep.subr.mxu1 %v2133_v0 }
  0x63   :  { %1711 = vmatpush3.msra.mxu0 %v2324_v38  ;;  %1738 = vmatpush3.msra.mxu1 %v2240_v35 }
  0x64   :  { %1712 = vmatprep.subr.mxu0 %v2133_v0  ;;  %1739 = vmatprep.subr.mxu1 %v2133_v0 }
  0x65   :  { %1713 = vmatpush3.msra.mxu0 %v2335_v49  ;;  %1740 = vmatpush3.msra.mxu1 %v2255_v45 }
  0x66   :  { %1714 = vmatprep.subr.mxu0 %v2133_v0  ;;  %1741 = vmatprep.subr.mxu1 %v2133_v0 }
  0x67   :  { %1715 = vmatpush3.msra.mxu0 %v2345_v54  ;;  %1716 = vmatprep.mubr.msk.f32.mxu0 %vm2134_vm0, %v2133_v0 }
  0x68   :  { %1742 = vmatpush3.msra.mxu1 %v2263_v48  ;;  %1717 = vmatmul.mubr.f32.vlgmr.msra.gmra.mxu0 %v2309_v26 }
  0x69   :  { %1743 = vmatprep.subr.mxu1 %v2133_v0  ;;  %1754 = vmatprep.subr.mxu0 %v2133_v0 }
  0x6a   :  { %1744 = vmatpush3.msra.mxu1 %v2280_v59  ;;  %1755 = vmatpush3.msra.mxu0 %v178_v22  ;;  %v736_v22 = vld [vmem:[#allocation7 + $0x50] sm:$0xff] }
  0x6b   :  { %1745 = vmatprep.subr.mxu1 %v2133_v0  ;;  %1756 = vmatprep.subr.mxu0 %v2133_v0 }
  0x6c   :  { %1746 = vmatpush3.msra.mxu1 %v2289_v63  ;;  %1757 = vmatpush3.msra.mxu0 %v185_v23  ;;  %v735_v23 = vld [vmem:[#allocation7 + $0x48] sm:$0xff] }
  0x6d   :  { %1747 = vmatprep.subr.mxu1 %v2133_v0  ;;  %1758 = vmatprep.subr.mxu0 %v2133_v0 }
  0x6e   :  { %1748 = vmatpush3.msra.mxu1 %v2304_v13  ;;  %1759 = vmatpush3.msra.mxu0 %v192_v24  ;;  %v734_v24 = vld [vmem:[#allocation7 + $0x40] sm:$0xff] }
  0x6f   :  { %1749 = vmatprep.subr.mxu1 %v2133_v0  ;;  %1760 = vmatprep.subr.mxu0 %v2133_v0 }
  0x70   :  { %1750 = vmatpush3.msra.mxu1 %v2316_v32  ;;  %1751 = vmatprep.mubr.msk.f32.mxu1 %vm2134_vm0, %v2133_v0 }
  0x71   :  { %1761 = vmatpush3.msra.mxu0 %v199_v27  ;;  %1752 = vmatmul.mubr.f32.vlgmr.msra.gmra.mxu1 %v167_v42  ;;  %v2564_v27 = vand.u32 4294901760, %v736_v22 }
  0x72   :  { %1762 = vmatprep.subr.mxu0 %v2133_v0  ;;  %1789 = vmatprep.subr.mxu1 %v2133_v0 }
  0x73   :  { %1763 = vmatpush3.msra.mxu0 %v206_v29  ;;  %1790 = vmatpush3.msra.mxu1 %v2181_v4  ;;  %v741_v4 = vld [vmem:[#allocation7 + $0x78] sm:$0xff]  ;;  %v2569_v29 = vand.u32 4294901760, %v734_v24 }
  0x74   :  { %1764 = vmatprep.subr.mxu0 %v2133_v0  ;;  %1791 = vmatprep.subr.mxu1 %v2133_v0 }
  0x75   :  { %1765 = vmatpush3.msra.mxu0 %v213_v40  ;;  %1792 = vmatpush3.msra.mxu1 %v2183_v5  ;;  %v2544_v5 = vand.u32 4294901760, %v741_v4  ;;  %v2579_v40 = vsub.f32 %v738_v15, %v2559_v21  ;;  %v2593_v47 = vsub.f32 %v734_v24, %v2569_v29  ;;  %v2671_v15 = vsub.f32 %v730_v36, %v2661_v51 }
  0x76   :  { %1766 = vmatprep.subr.mxu0 %v2133_v0  ;;  %1793 = vmatprep.subr.mxu1 %v2133_v0 }
  0x77   :  { %1767 = vmatpush3.msra.mxu0 %v220_v46  ;;  %1794 = vmatpush3.msra.mxu1 %v2185_v6  ;;  %v740_v6 = vld [vmem:[#allocation7 + $0x70] sm:$0xff]  ;;  %v892_v31 = vand.u32 4294901760, %v2593_v47 }
  0x78   :  { %1768 = vmatprep.subr.mxu0 %v2133_v0  ;;  %1795 = vmatprep.subr.mxu1 %v2133_v0 }
  0x79   :  { %1769 = vmatpush3.msra.mxu0 %v227_v53  ;;  %1796 = vmatpush3.msra.mxu1 %v2187_v10  ;;  %v2547_v10 = vsub.f32 %v741_v4, %v2544_v5  ;;  %v893_v56 = vsub.f32 %v2593_v47, %v892_v31  ;;  %v729_v4 = vld [vmem:[#allocation7 + $0x18] sm:$0xff] }
  0x7a   :  { %1770 = vmatprep.subr.mxu0 %v2133_v0  ;;  %1797 = vmatprep.subr.mxu1 %v2133_v0 }
  0x7b   :  { %1771 = vmatpush3.msra.mxu0 %v234_v57  ;;  %1798 = vmatpush3.msra.mxu1 %v2189_v11  ;;  %v2549_v11 = vand.u32 4294901760, %v740_v6 }
  0x7c   :  { %1772 = vmatprep.subr.mxu0 %v2133_v0  ;;  %1799 = vmatprep.subr.mxu1 %v2133_v0 }
  0x7d   :  { %1773 = vmatpush3.msra.mxu0 %v241_v3  ;;  %1800 = vmatpush3.msra.mxu1 %v2191_v12  ;;  %v739_v12 = vld [vmem:[#allocation7 + $0x68] sm:$0xff]  ;;  %v2555_v18 = vsub.f32 %v740_v6, %v2549_v11  ;;  %v907_v6 = vsub.f32 %v2650_v14, %v906_v41 }
  0x7e   :  { %1774 = vmatprep.subr.mxu0 %v2133_v0  ;;  %1801 = vmatprep.subr.mxu1 %v2133_v0  ;;  %v2557_v20 = vand.u32 4294901760, %v739_v12 }
  0x7f   :  { %1775 = vmatpush3.msra.mxu0 %v248_v19  ;;  %1802 = vmatpush3.msra.mxu1 %v2200_v17  ;;  %v843_v17 = vand.u32 4294901760, %v2547_v10  ;;  %v850_v34 = vand.u32 4294901760, %v2555_v18 }
  0x80   :  { %1776 = vmatprep.subr.mxu0 %v2133_v0  ;;  %1803 = vmatprep.subr.mxu1 %v2133_v0 }
  0x81   :  { %1777 = vmatpush3.msra.mxu0 %v255_v37  ;;  %1804 = vmatpush3.msra.mxu1 %v2216_v25  ;;  %v2562_v25 = vand.u32 4294901760, %v737_v16  ;;  %v844_v30 = vsub.f32 %v2547_v10, %v843_v17  ;;  %v851_v55 = vsub.f32 %v2555_v18, %v850_v34 }
  0x82   :  { %1778 = vmatprep.subr.mxu0 %v2133_v0  ;;  %1805 = vmatprep.subr.mxu1 %v2133_v0 }
  0x83   :  { %1779 = vmatpush3.msra.mxu0 %v262_v44  ;;  %1806 = vmatpush3.msra.mxu1 %v2220_v28  ;;  %v2567_v28 = vand.u32 4294901760, %v735_v23  ;;  %v2583_v43 = vsub.f32 %v737_v16, %v2562_v25  ;;  %v845_v53 = vand.u32 4294901760, %v844_v30  ;;  %v852_v3 = vand.u32 4294901760, %v851_v55  ;;  %v727_v55 = vld [vmem:[#allocation7 + $0x8] sm:$0xff] }
  0x84   :  { %1780 = vmatprep.subr.mxu0 %v2133_v0  ;;  %1807 = vmatprep.subr.mxu1 %v2133_v0  ;;  %v2673_v16 = vand.u32 4294901760, %v729_v4  ;;  %v920_v30 = vand.u32 4294901760, %v2671_v15 }
  0x85   :  { %1781 = vmatpush3.msra.mxu0 %v269_v52  ;;  %1808 = vmatpush3.msra.mxu1 %v2240_v35  ;;  %v2576_v35 = vsub.f32 %v739_v12, %v2557_v20  ;;  %v2589_v46 = vsub.f32 %v735_v23, %v2567_v28  ;;  %v871_v61 = vand.u32 4294901760, %v2583_v43  ;;  %v913_v12 = vand.u32 4294901760, %v2659_v50 }
  0x86   :  { %1782 = vmatprep.subr.mxu0 %v2133_v0  ;;  %1809 = vmatprep.subr.mxu1 %v2133_v0  ;;  %v908_v23 = vand.u32 4294901760, %v907_v6 }
  0x87   :  { %1783 = vmatpush3.msra.mxu0 %v276_v1  ;;  %1810 = vmatpush3.msra.mxu1 %v2255_v45  ;;  %v2586_v45 = vsub.f32 %v736_v22, %v2564_v27  ;;  %v857_v57 = vand.u32 4294901760, %v2576_v35  ;;  %v872_v26 = vsub.f32 %v2583_v43, %v871_v61  ;;  %v728_v22 = vld [vmem:[#allocation7 + $0x10] sm:$0xff]  ;;  %v914_v24 = vsub.f32 %v2659_v50, %v913_v12 }
  0x88   :  { %1784 = vmatprep.subr.mxu0 %v2133_v0  ;;  %1811 = vmatprep.subr.mxu1 %v2133_v0 }
  0x89   :  { %1785 = vmatpush3.msra.mxu0 %v283_v9  ;;  %1786 = vmatprep.mubr.msk.f32.mxu0 %vm2134_vm0, %v2133_v0  ;;  %v858_v8 = vsub.f32 %v2576_v35, %v857_v57  ;;  %v873_v44 = vand.u32 4294901760, %v872_v26  ;;  %v894_v9 = vand.u32 4294901760, %v893_v56  ;;  %v2694_v26 = vand.u32 4294901760, %v727_v55 }
  0x8a   :  { %1812 = vmatpush3.msra.mxu1 %v2263_v48  ;;  %1787 = vmatmul.mubr.f32.vlgmr.msra.gmra.mxu0 %v2285_v62  ;;  %v733_v48 = vld [vmem:[#allocation7 + $0x38] sm:$0xff] }
  0x8b   :  { %1813 = vmatprep.subr.mxu1 %v2133_v0  ;;  %1821 = vmatprep.mubr.msk.f32.mxu1 %vm2134_vm0, %v2133_v0  ;;  %v2612_v19 = vand.u32 4294901760, %v733_v48 }
  0x8c   :  { %1814 = vmatpush3.msra.mxu1 %v2280_v59  ;;  %1824 = vmatprep.subr.mxu0 %v2133_v0  ;;  %v864_v59 = vand.u32 4294901760, %v2579_v40 }
  0x8d   :  { %1815 = vmatprep.subr.mxu1 %v2133_v0  ;;  %1856 = vmatprep.mubr.msk.f32.mxu0 %vm2134_vm0, %v2133_v0  ;;  %v2623_v42 = vsub.f32 %v733_v48, %v2612_v19  ;;  %v2683_v48 = vsub.f32 %v729_v4, %v2673_v16 }
  0x8e   :  { %1816 = vmatpush3.msra.mxu1 %v2289_v63  ;;  %1825 = vmatpush3.msra.mxu0 %v2544_v5  ;;  %v885_v63 = vand.u32 4294901760, %v2589_v46 }
  0x8f   :  { %1817 = vmatprep.subr.mxu1 %v2133_v0  ;;  %1826 = vmatprep.subr.mxu0 %v2133_v0  ;;  %v899_v52 = vand.u32 4294901760, %v2623_v42 }
  0x90   :  { %1818 = vmatpush3.msra.mxu1 %v2304_v13  ;;  %1827 = vmatpush3.msra.mxu0 %v2549_v11  ;;  %v865_v13 = vsub.f32 %v2579_v40, %v864_v59  ;;  %v886_v49 = vsub.f32 %v2589_v46, %v885_v63 }
  0x91   :  { %1819 = vmatprep.subr.mxu1 %v2133_v0  ;;  %1828 = vmatprep.subr.mxu0 %v2133_v0  ;;  %v900_v1 = vsub.f32 %v2623_v42, %v899_v52 }
  0x92   :  { %1820 = vmatpush3.msra.mxu1 %v2316_v32  ;;  %1829 = vmatpush3.msra.mxu0 %v2557_v20  ;;  %v859_v32 = vand.u32 4294901760, %v858_v8  ;;  %v866_v37 = vand.u32 4294901760, %v865_v13  ;;  %v887_v60 = vand.u32 4294901760, %v886_v49  ;;  %v921_v8 = vsub.f32 %v2671_v15, %v920_v30 }
  0x93   :  { %1822 = vmatmul.mubr.f32.vlgmr.msra.gmra.mxu1 %v2285_v62  ;;  %1859 = vmatprep.subr.mxu1 %v2133_v0  ;;  %v878_v62 = vand.u32 4294901760, %v2586_v45  ;;  %v901_v39 = vand.u32 4294901760, %v900_v1  ;;  %v2915_v13 = vand.u32 4294901760, %v2683_v48  ;;  %v2706_v49 = vsub.f32 %v727_v55, %v2694_v26 }
  0x94   :  { %1891 = vmatprep.mubr.msk.f32.mxu1 %vm2134_vm0, %v2133_v0  ;;  %1830 = vmatprep.subr.mxu0 %v2133_v0 }
  0x95   :  { %1831 = vmatpush3.msra.mxu0 %v2559_v21  ;;  %1860 = vmatpush3.msra.mxu1 %v845_v53  ;;  %v879_v38 = vsub.f32 %v2586_v45, %v878_v62  ;;  %v2687_v53 = vand.u32 4294901760, %v728_v22 }
  0x96   :  { %1832 = vmatprep.subr.mxu0 %v2133_v0  ;;  %1861 = vmatprep.subr.mxu1 %v2133_v0 }
  0x97   :  { %1833 = vmatpush3.msra.mxu0 %v2562_v25  ;;  %1862 = vmatpush3.msra.mxu1 %v852_v3  ;;  %v880_v54 = vand.u32 4294901760, %v879_v38  ;;  %v915_v3 = vand.u32 4294901760, %v914_v24  ;;  %v922_v38 = vand.u32 4294901760, %v921_v8 }
  0x98   :  { %1834 = vmatprep.subr.mxu0 %v2133_v0  ;;  %1863 = vmatprep.subr.mxu1 %v2133_v0 }
  0x99   :  { %1835 = vmatpush3.msra.mxu0 %v2564_v27  ;;  %1864 = vmatpush3.msra.mxu1 %v859_v32  ;;  %v2699_v32 = vsub.f32 %v728_v22, %v2687_v53 }
  0x9a   :  { %1836 = vmatprep.subr.mxu0 %v2133_v0  ;;  %1865 = vmatprep.subr.mxu1 %v2133_v0 }
  0x9b   :  { %1837 = vmatpush3.msra.mxu0 %v2567_v28  ;;  %1866 = vmatpush3.msra.mxu1 %v866_v37  ;;  %v726_v37 = vld [vmem:[#allocation7] sm:$0xff]  ;;  %v2914_v56 = vand.u32 4294901760, %v2699_v32 }
  0x9c   :  { %1838 = vmatprep.subr.mxu0 %v2133_v0  ;;  %1867 = vmatprep.subr.mxu1 %v2133_v0 }
  0x9d   :  { %1839 = vmatpush3.msra.mxu0 %v2569_v29  ;;  %1868 = vmatpush3.msra.mxu1 %v873_v44  ;;  %v928_v44 = vsub.f32 %v2683_v48, %v2915_v13  ;;  %v935_v7 = vsub.f32 %v2699_v32, %v2914_v56 }
  0x9e   :  { %1840 = vmatprep.subr.mxu0 %v2133_v0  ;;  %1869 = vmatprep.subr.mxu1 %v2133_v0 }
  0x9f   :  { %1841 = vmatpush3.msra.mxu0 %v2612_v19  ;;  %1870 = vmatpush3.msra.mxu1 %v880_v54  ;;  %v2708_v54 = vand.u32 4294901760, %v726_v37  ;;  %v929_v58 = vand.u32 4294901760, %v928_v44 }
  0xa0   :  { %1842 = vmatprep.subr.mxu0 %v2133_v0  ;;  %1871 = vmatprep.subr.mxu1 %v2133_v0 }
  0xa1   :  { %1843 = vmatpush3.msra.mxu0 %v2644_v2  ;;  %1872 = vmatpush3.msra.mxu1 %v887_v60  ;;  %v2913_v60 = vand.u32 4294901760, %v2706_v49  ;;  %v2716_v1 = vsub.f32 %v726_v37, %v2708_v54 }
  0xa2   :  { %1844 = vmatprep.subr.mxu0 %v2133_v0  ;;  %1873 = vmatprep.subr.mxu1 %v2133_v0 }
  0xa3   :  { %1845 = vmatpush3.msra.mxu0 %v2652_v33  ;;  %1874 = vmatpush3.msra.mxu1 %v894_v9  ;;  %v942_v9 = vsub.f32 %v2706_v49, %v2913_v60  ;;  %v2912_v36 = vand.u32 4294901760, %v2716_v1 }
  0xa4   :  { %1846 = vmatprep.subr.mxu0 %v2133_v0  ;;  %1875 = vmatprep.subr.mxu1 %v2133_v0 }
  0xa5   :  { %1847 = vmatpush3.msra.mxu0 %v2661_v51  ;;  %1876 = vmatpush3.msra.mxu1 %v901_v39  ;;  %v936_v39 = vand.u32 4294901760, %v935_v7  ;;  %v943_v4 = vand.u32 4294901760, %v942_v9  ;;  %v949_v6 = vsub.f32 %v2716_v1, %v2912_v36 }
  0xa6   :  { %1848 = vmatprep.subr.mxu0 %v2133_v0  ;;  %1877 = vmatprep.subr.mxu1 %v2133_v0 }
  0xa7   :  { %1849 = vmatpush3.msra.mxu0 %v2673_v16  ;;  %1878 = vmatpush3.msra.mxu1 %v908_v23  ;;  %v950_v22 = vand.u32 4294901760, %v949_v6 }
  0xa8   :  { %1850 = vmatprep.subr.mxu0 %v2133_v0  ;;  %1879 = vmatprep.subr.mxu1 %v2133_v0 }
  0xa9   :  { %1851 = vmatpush3.msra.mxu0 %v2687_v53  ;;  %1880 = vmatpush3.msra.mxu1 %v915_v3 }
  0xaa   :  { %1852 = vmatprep.subr.mxu0 %v2133_v0  ;;  %1881 = vmatprep.subr.mxu1 %v2133_v0 }
  0xab   :  { %1853 = vmatpush3.msra.mxu0 %v2694_v26  ;;  %1882 = vmatpush3.msra.mxu1 %v922_v38 }
  0xac   :  { %1854 = vmatprep.subr.mxu0 %v2133_v0  ;;  %1883 = vmatprep.subr.mxu1 %v2133_v0 }
  0xad   :  { %1855 = vmatpush3.msra.mxu0 %v2708_v54  ;;  %1884 = vmatpush3.msra.mxu1 %v929_v58  ;;  %v1408_v58 = vld [vmem:[%s2908_s2] ss:$0 sm:$0xff] }
  0xae   :  { %1894 = vmatprep.subr.mxu0 %v2133_v0  ;;  %1885 = vmatprep.subr.mxu1 %v2133_v0 }
  0xaf   :  { %1886 = vmatpush3.msra.mxu1 %v936_v39 }
  0xb0   :  { %1887 = vmatprep.subr.mxu1 %v2133_v0 }
  0xb1   :  { %1888 = vmatpush3.msra.mxu1 %v943_v4 }
  0xb2   :  { %1889 = vmatprep.subr.mxu1 %v2133_v0 }
  0xb3   :  { %1890 = vmatpush3.msra.mxu1 %v950_v22 }
  0xb4   :  { %1929 = vmatprep.subr.mxu1 %v2133_v0 }
 0x108   :  { %v171_v23 = vpop.f32.mrf.mxu0 }
 0x109   :  { %v172_v7 = vadd.f32 %v1408_v58, %v171_v23 }
 0x10a   :  { %v1648_v24 = vpop.f32.mrf.mxu0 }
 0x10f   :  { %v322_v55 = vpop.f32.mrf.mxu1 }
 0x110   :  { %v323_v39 = vadd.f32 %v322_v55, %v172_v7 }
 0x111   :  { %v1683_v3 = vpop.f32.mrf.mxu1 }
 0x128   :  { %v426_v8 = vpop.f32.mrf.mxu0 }
 0x129   :  { %v427_v6 = vadd.f32 %v426_v8, %v323_v39 }
 0x12a   :  { %v1718_v37 = vpop.f32.mrf.mxu0 }
 0x131   :  { %v515_v38 = vpop.f32.mrf.mxu1 }
 0x132   :  { %v516_v22 = vadd.f32 %v515_v38, %v427_v6 }
 0x133   :  { %v1753_v44 = vpop.f32.mrf.mxu1 }
 0x14a   :  { %v634_v9 = vpop.f32.mrf.mxu0 }
 0x14b   :  { %v635_v36 = vadd.f32 %v634_v9, %v516_v22 }
 0x14c   :  { %v1788_v4 = vpop.f32.mrf.mxu0 }
 0x153   :  { %v721_v60 = vpop.f32.mrf.mxu1 }
 0x154   :  { %v722_v56 = vadd.f32 %v721_v60, %v635_v36 }
 0x155   :  { %v1823_v24 = vpop.f32.mrf.mxu1 }
 0x156   :  { %v725_v13 = vmax.f32 %v722_v56, 0.0 }
 0x158   :  { %v2739_v3 = vand.u32 4294901760, %v725_v13 }
 0x15a   :  { %v2742_v37 = vsub.f32 %v725_v13, %v2739_v3  ;;  %1892 = vmatmul.mubr.f32.vlgmr.msra.gmra.mxu1 %v2739_v3 }
 0x15b   :  { %1930 = vmatpush3.msra.mxu1 %v2544_v5  ;;  %1961 = vmatprep.mubr.msk.f32.mxu1 %vm2134_vm0, %v2133_v0 }
 0x15c   :  { %v832_v23 = vand.u32 4294901760, %v2742_v37  ;;  %1931 = vmatprep.subr.mxu1 %v2133_v0 }
 0x15d   :  { %1932 = vmatpush3.msra.mxu1 %v2549_v11 }
 0x15e   :  { %v833_v56 = vsub.f32 %v2742_v37, %v832_v23  ;;  %1933 = vmatprep.subr.mxu1 %v2133_v0 }
 0x15f   :  { %1934 = vmatpush3.msra.mxu1 %v2557_v20 }
 0x160   :  { %1935 = vmatprep.subr.mxu1 %v2133_v0  ;;  %v834_v13 = vand.u32 4294901760, %v833_v56 }
 0x161   :  { %1936 = vmatpush3.msra.mxu1 %v2559_v21 }
 0x162   :  { %1937 = vmatprep.subr.mxu1 %v2133_v0  ;;  %1857 = vmatmul.mubr.f32.vlgmr.msra.gmra.mxu0 %v834_v13 }
 0x163   :  { %1895 = vmatpush3.msra.mxu0 %v2547_v10  ;;  %1938 = vmatpush3.msra.mxu1 %v2562_v25  ;;  %v2917_v10 = vand.u32 4294901760, %v2699_v32 }
 0x164   :  { %1896 = vmatprep.subr.mxu0 %v2133_v0  ;;  %1939 = vmatprep.subr.mxu1 %v2133_v0 }
 0x165   :  { %1897 = vmatpush3.msra.mxu0 %v2555_v18  ;;  %1940 = vmatpush3.msra.mxu1 %v2564_v27 }
 0x166   :  { %1898 = vmatprep.subr.mxu0 %v2133_v0  ;;  %1941 = vmatprep.subr.mxu1 %v2133_v0 }
 0x167   :  { %1899 = vmatpush3.msra.mxu0 %v2576_v35  ;;  %1942 = vmatpush3.msra.mxu1 %v2567_v28  ;;  %v1409_v35 = vld [vmem:[%s2910_s4] ss:$0 sm:$0xff] }
 0x168   :  { %1900 = vmatprep.subr.mxu0 %v2133_v0  ;;  %1943 = vmatprep.subr.mxu1 %v2133_v0 }
 0x169   :  { %1901 = vmatpush3.msra.mxu0 %v2579_v40  ;;  %1944 = vmatpush3.msra.mxu1 %v2569_v29 }
 0x16a   :  { %1902 = vmatprep.subr.mxu0 %v2133_v0  ;;  %1945 = vmatprep.subr.mxu1 %v2133_v0 }
 0x16b   :  { %1903 = vmatpush3.msra.mxu0 %v2583_v43  ;;  %1946 = vmatpush3.msra.mxu1 %v2612_v19 }
 0x16c   :  { %1904 = vmatprep.subr.mxu0 %v2133_v0  ;;  %1947 = vmatprep.subr.mxu1 %v2133_v0 }
 0x16d   :  { %1905 = vmatpush3.msra.mxu0 %v2586_v45  ;;  %1948 = vmatpush3.msra.mxu1 %v2644_v2 }
 0x16e   :  { %1906 = vmatprep.subr.mxu0 %v2133_v0  ;;  %1949 = vmatprep.subr.mxu1 %v2133_v0 }
 0x16f   :  { %1907 = vmatpush3.msra.mxu0 %v2589_v46  ;;  %1950 = vmatpush3.msra.mxu1 %v2652_v33 }
 0x170   :  { %1908 = vmatprep.subr.mxu0 %v2133_v0  ;;  %1951 = vmatprep.subr.mxu1 %v2133_v0 }
 0x171   :  { %1909 = vmatpush3.msra.mxu0 %v2593_v47  ;;  %1952 = vmatpush3.msra.mxu1 %v2661_v51 }
 0x172   :  { %1910 = vmatprep.subr.mxu0 %v2133_v0  ;;  %1953 = vmatprep.subr.mxu1 %v2133_v0 }
 0x173   :  { %1911 = vmatpush3.msra.mxu0 %v2623_v42  ;;  %1954 = vmatpush3.msra.mxu1 %v2673_v16 }
 0x174   :  { %1912 = vmatprep.subr.mxu0 %v2133_v0  ;;  %1955 = vmatprep.subr.mxu1 %v2133_v0 }
 0x175   :  { %1913 = vmatpush3.msra.mxu0 %v2650_v14  ;;  %1956 = vmatpush3.msra.mxu1 %v2687_v53 }
 0x176   :  { %1914 = vmatprep.subr.mxu0 %v2133_v0  ;;  %1957 = vmatprep.subr.mxu1 %v2133_v0 }
 0x177   :  { %1915 = vmatpush3.msra.mxu0 %v2659_v50  ;;  %1958 = vmatpush3.msra.mxu1 %v2694_v26 }
 0x178   :  { %1916 = vmatprep.subr.mxu0 %v2133_v0  ;;  %1959 = vmatprep.subr.mxu1 %v2133_v0 }
 0x179   :  { %1917 = vmatpush3.msra.mxu0 %v2671_v15  ;;  %1960 = vmatpush3.msra.mxu1 %v2708_v54 }
 0x17a   :  { %1918 = vmatprep.subr.mxu0 %v2133_v0  ;;  %1962 = vmatmul.mubr.f32.vlgmr.msra.gmra.mxu1 %v832_v23 }
 0x17b   :  { %1999 = vmatprep.subr.mxu1 %v2133_v0  ;;  %1919 = vmatpush3.msra.mxu0 %v2683_v48 }
 0x17c   :  { %2000 = vmatpush3.msra.mxu1 %v2544_v5  ;;  %1920 = vmatprep.subr.mxu0 %v2133_v0  ;;  %v2916_v5 = vand.u32 4294901760, %v2683_v48 }
 0x17d   :  { %2001 = vmatprep.subr.mxu1 %v2133_v0  ;;  %1921 = vmatpush3.msra.mxu0 %v2699_v32 }
 0x17e   :  { %2002 = vmatpush3.msra.mxu1 %v2549_v11  ;;  %1922 = vmatprep.subr.mxu0 %v2133_v0  ;;  %v2918_v11 = vand.u32 4294901760, %v2706_v49 }
 0x17f   :  { %2003 = vmatprep.subr.mxu1 %v2133_v0  ;;  %1923 = vmatpush3.msra.mxu0 %v2706_v49 }
 0x180   :  { %2004 = vmatpush3.msra.mxu1 %v2557_v20  ;;  %1924 = vmatprep.subr.mxu0 %v2133_v0 }
 0x181   :  { %2005 = vmatprep.subr.mxu1 %v2133_v0  ;;  %1925 = vmatpush3.msra.mxu0 %v2716_v1 }
 0x182   :  { %1926 = vmatprep.mubr.msk.f32.mxu0 %vm2134_vm0, %v2133_v0  ;;  %2006 = vmatpush3.msra.mxu1 %v2559_v21 }
 0x183   :  { %1927 = vmatmul.mubr.f32.vlgmr.msra.gmra.mxu0 %v2742_v37  ;;  %1964 = vmatprep.subr.mxu0 %v2133_v0 }
 0x184   :  { %2007 = vmatprep.subr.mxu1 %v2133_v0  ;;  %1965 = vmatpush3.msra.mxu0 %v843_v17  ;;  %v2919_v17 = vand.u32 4294901760, %v2716_v1 }
 0x185   :  { %2008 = vmatpush3.msra.mxu1 %v2562_v25  ;;  %1966 = vmatprep.subr.mxu0 %v2133_v0 }
 0x186   :  { %2009 = vmatprep.subr.mxu1 %v2133_v0  ;;  %1967 = vmatpush3.msra.mxu0 %v850_v34 }
 0x187   :  { %2010 = vmatpush3.msra.mxu1 %v2564_v27  ;;  %1968 = vmatprep.subr.mxu0 %v2133_v0 }
 0x188   :  { %2011 = vmatprep.subr.mxu1 %v2133_v0  ;;  %1969 = vmatpush3.msra.mxu0 %v857_v57 }
 0x189   :  { %2012 = vmatpush3.msra.mxu1 %v2567_v28  ;;  %1970 = vmatprep.subr.mxu0 %v2133_v0 }
 0x18a   :  { %2013 = vmatprep.subr.mxu1 %v2133_v0  ;;  %1971 = vmatpush3.msra.mxu0 %v864_v59 }
 0x18b   :  { %2014 = vmatpush3.msra.mxu1 %v2569_v29  ;;  %1972 = vmatprep.subr.mxu0 %v2133_v0 }
 0x18c   :  { %2015 = vmatprep.subr.mxu1 %v2133_v0  ;;  %1973 = vmatpush3.msra.mxu0 %v871_v61 }
 0x18d   :  { %2016 = vmatpush3.msra.mxu1 %v2612_v19  ;;  %1974 = vmatprep.subr.mxu0 %v2133_v0 }
 0x18e   :  { %2017 = vmatprep.subr.mxu1 %v2133_v0  ;;  %1975 = vmatpush3.msra.mxu0 %v878_v62 }
 0x18f   :  { %2018 = vmatpush3.msra.mxu1 %v2644_v2  ;;  %1976 = vmatprep.subr.mxu0 %v2133_v0 }
 0x190   :  { %2019 = vmatprep.subr.mxu1 %v2133_v0  ;;  %1977 = vmatpush3.msra.mxu0 %v885_v63 }
 0x191   :  { %2020 = vmatpush3.msra.mxu1 %v2652_v33  ;;  %1978 = vmatprep.subr.mxu0 %v2133_v0 }
 0x192   :  { %2021 = vmatprep.subr.mxu1 %v2133_v0  ;;  %1979 = vmatpush3.msra.mxu0 %v892_v31 }
 0x193   :  { %2022 = vmatpush3.msra.mxu1 %v2661_v51  ;;  %1980 = vmatprep.subr.mxu0 %v2133_v0 }
 0x194   :  { %2023 = vmatprep.subr.mxu1 %v2133_v0  ;;  %1981 = vmatpush3.msra.mxu0 %v899_v52 }
 0x195   :  { %2024 = vmatpush3.msra.mxu1 %v2673_v16  ;;  %1982 = vmatprep.subr.mxu0 %v2133_v0 }
 0x196   :  { %2025 = vmatprep.subr.mxu1 %v2133_v0  ;;  %1983 = vmatpush3.msra.mxu0 %v906_v41 }
 0x197   :  { %2026 = vmatpush3.msra.mxu1 %v2687_v53  ;;  %1984 = vmatprep.subr.mxu0 %v2133_v0 }
 0x198   :  { %2027 = vmatprep.subr.mxu1 %v2133_v0  ;;  %1985 = vmatpush3.msra.mxu0 %v913_v12 }
 0x199   :  { %2028 = vmatpush3.msra.mxu1 %v2694_v26  ;;  %1986 = vmatprep.subr.mxu0 %v2133_v0 }
 0x19a   :  { %2029 = vmatprep.subr.mxu1 %v2133_v0  ;;  %1987 = vmatpush3.msra.mxu0 %v920_v30 }
 0x19b   :  { %2030 = vmatpush3.msra.mxu1 %v2708_v54  ;;  %2031 = vmatprep.mubr.msk.f32.mxu1 %vm2134_vm0, %v2133_v0 }
 0x19c   :  { %1988 = vmatprep.subr.mxu0 %v2133_v0  ;;  %2032 = vmatmul.mubr.f32.vlgmr.msra.gmra.mxu1 %v2739_v3 }
 0x19d   :  { %1989 = vmatpush3.msra.mxu0 %v2916_v5  ;;  %1996 = vmatprep.mubr.msk.f32.mxu0 %vm2134_vm0, %v2133_v0 }
 0x19e   :  { %1990 = vmatprep.subr.mxu0 %v2133_v0 }
 0x19f   :  { %1991 = vmatpush3.msra.mxu0 %v2917_v10 }
 0x1a0   :  { %1992 = vmatprep.subr.mxu0 %v2133_v0 }
 0x1a1   :  { %1993 = vmatpush3.msra.mxu0 %v2918_v11 }
 0x1a2   :  { %1994 = vmatprep.subr.mxu0 %v2133_v0 }
 0x1a3   :  { %1995 = vmatpush3.msra.mxu0 %v2919_v17 }
 0x1a4   :  { %1997 = vmatmul.mubr.f32.vlgmr.msra.gmra.mxu0 %v2739_v3 }
 0x21a   :  { %v987_v18 = vpop.f32.mrf.mxu1 }
 0x21c   :  { %v1893_v20 = vpop.f32.mrf.mxu1 }
 0x222   :  { %v836_v21 = vpop.f32.mrf.mxu0 }
 0x223   :  { %v837_v40 = vadd.f32 %v1409_v35, %v836_v21 }
 0x224   :  { %v1858_v25 = vpop.f32.mrf.mxu0 }
 0x225   :  { %v988_v0 = vadd.f32 %v987_v18, %v837_v40 }
 0x23a   :  { %v1180_v27 = vpop.f32.mrf.mxu1 }
 0x23c   :  { %v1963_v28 = vpop.f32.mrf.mxu1 }
 0x243   :  { %v1091_v29 = vpop.f32.mrf.mxu0 }
 0x244   :  { %v1092_v46 = vadd.f32 %v1091_v29, %v988_v0 }
 0x245   :  { %v1928_v34 = vpop.f32.mrf.mxu0 }
 0x246   :  { %v1181_v47 = vadd.f32 %v1180_v27, %v1092_v46 }
 0x25c   :  { %v1386_v43 = vpop.f32.mrf.mxu1 }
 0x25e   :  { %v2033_v45 = vpop.f32.mrf.mxu1 }
 0x264   :  { %v1299_v57 = vpop.f32.mrf.mxu0 }
 0x265   :  { %v1300_v59 = vadd.f32 %v1299_v57, %v1181_v47 }
 0x266   :  { %v1998_v61 = vpop.f32.mrf.mxu0 }
 0x267   :  { %v1387_v62 = vadd.f32 %v1386_v43, %v1300_v59 }
 0x269   :  { %v1390_v63 = vmax.f32 %v1387_v62, 0.0 }
 0x26b   :  { %1391 = vst [vmem:[#allocation8] sm:$0xff] %v1390_v63 }
 0x26c   :  { %2113 = shalt.err (!%p2110_p5)
}
 0x26d   :  { %1401 = dma.vmem_to_hbm [thread:$0]  %s1399_s11, 128, %s2911_s5, [#allocation4]  }
 0x26e   :  { %2126 = dma.done.wait [#allocation4], 128  }
 0x26f   :  { %2127 = vsyncadd [#allocation4], 4294967168 }
 0x270   :  { %1405 = vsyncpa [#allocation3], 1 }
 0x271   :  { %1406 = vsyncpa [#allocation6], 1 }
 0x272   :  { %1407 = vsyncpa [#allocation4], 1 }

</bundles_post_ra>
